<compile_context>
chip_gen: v7x
topology: tpu7x:2x2x1
jax: 0.10.0
libtpu: 0.0.40
codegen_flags: <defaults>
</compile_context>

<pallas_src>
import functools

import numpy as np
import jax
import jax.numpy as jnp
from jax.experimental import pallas as pl
from jax.experimental.pallas import tpu as pltpu


# ---------------------------------------------------------------------------
# Fused TT-linear kernel
# ---------------------------------------------------------------------------

def _tt_linear_kernel(x_ref, c1_ref, c2_ref, c3_ref, p_ref, b_ref, o_ref,
                      w3_ref, w2_ref, w1_ref, *,
                      n1, n2, n3, m1, m2, m3, r1, r2):
    """Fused TT-matrix reconstruction + matmul + bias.

    x_ref : (bt, n1*n2*n3)       activation tile (columns ordered (i1,i2,i3))
    c1_ref: (n1, r1, m1)         packed core 1   C1[i1, a, j1]    = G1[0,i1,j1,a]
    c2_ref: (n2, r2, m2*r1)      packed core 2   C2[i2, c, j2r1]  = G2[a,i2,j2,c]
    c3_ref: (n3, m3*r2)          packed core 3   C3[i3, j3r2]     = G3[c,i3,j3,0]
    p_ref : (M, M)               constant 0/1 permutation (j3,j2,j1)->(j1,j2,j3)
    b_ref : (1, M)               bias
    o_ref : (bt, M)              output tile (columns ordered (j1,j2,j3))
    w*_ref: VMEM scratch holding the block-structured TT factor matrices.
    """
    gin = n2 * n3          # input features handled per i1 slice
    gj3 = m3 * r2          # (j3, r2) block width after contracting core 3
    gj2 = m2 * r1          # (j2, r1) block width after contracting core 2
    M = m1 * m2 * m3

    # --- build block-structured factor matrices in VMEM scratch -------------
    # (rebuilt every grid step -> the 'parallel' batch axis is megacore-safe;
    #  it is only a handful of small vector stores)
    w3_ref[...] = jnp.zeros_like(w3_ref)
    w2_ref[...] = jnp.zeros_like(w2_ref)
    w1_ref[...] = jnp.zeros_like(w1_ref)

    # W3[(i2,i3), (i2,j3,r2)] = G3[r2,i3,j3]        (block-diagonal over i2)
    c3 = c3_ref[...]                                            # (n3, m3*r2)
    for i2 in range(n2):
        w3_ref[i2 * n3:(i2 + 1) * n3, i2 * gj3:(i2 + 1) * gj3] = c3

    # W2[(i2,j3,r2), (j3,j2,r1)] = G2[r1,i2,j2,r2]  (j3 is a pass-through spectator)
    for i2 in range(n2):
        c2_blk = c2_ref[i2]                                     # (r2, m2*r1)
        for j3 in range(m3):
            row = i2 * gj3 + j3 * r2
            w2_ref[row:row + r2, j3 * gj2:(j3 + 1) * gj2] = c2_blk

    # W1[i1][(j3,j2,r1), (j3,j2,j1)] = G1[0,i1,j1,r1]  (block-diagonal over (j3,j2))
    for i1 in range(n1):
        c1_blk = c1_ref[i1]                                     # (r1, m1)
        for q in range(m3 * m2):
            w1_ref[i1, q * r1:(q + 1) * r1, q * m1:(q + 1) * m1] = c1_blk

    w3 = w3_ref[...]
    w2 = w2_ref[...]

    # --- contract activations against the TT cores (all MXU, all in VMEM) ---
    bt = x_ref.shape[0]
    y_pre = jnp.zeros((bt, M), jnp.float32)        # columns ordered (j3, j2, j1)
    for i1 in range(n1):
        x_i1 = x_ref[:, i1 * gin:(i1 + 1) * gin]                            # (bt, n2*n3)
        t1 = jnp.dot(x_i1, w3, preferred_element_type=jnp.float32)          # (bt, n2*m3*r2)
        t2 = jnp.dot(t1, w2, preferred_element_type=jnp.float32)            # (bt, m3*m2*r1)
        y_pre = y_pre + jnp.dot(t2, w1_ref[i1],
                                preferred_element_type=jnp.float32)         # (bt, M)

    # --- reorder columns (j3,j2,j1) -> (j1,j2,j3) via exact 0/1 matmul, add bias
    y = jnp.dot(y_pre, p_ref[...], preferred_element_type=jnp.float32)
    o_ref[...] = y + b_ref[...]


def tt_linear_forward(x, cores, bias, *, batch_tile=256):
    """y = dense_tt_matmul(x, TT(cores)) + bias, as one fused Pallas call."""
    g1, g2, g3 = cores
    r0, n1, m1, r1 = g1.shape
    _, n2, m2, r2 = g2.shape
    _, n3, m3, r3 = g3.shape
    assert r0 == 1 and r3 == 1
    B, N = x.shape
    M = m1 * m2 * m3
    assert N == n1 * n2 * n3

    # --- weight packing (tiny, O(core size); analogous to pre-transposing a dense W)
    c1m = jnp.transpose(g1[0], (0, 2, 1)).astype(jnp.float32)                     # (n1, r1, m1)
    c2m = jnp.transpose(g2, (1, 3, 2, 0)).reshape(n2, r2, m2 * r1).astype(jnp.float32)
    c3m = jnp.transpose(g3[..., 0], (1, 2, 0)).reshape(n3, m3 * r2).astype(jnp.float32)

    # constant output-column permutation (j3,j2,j1) -> (j1,j2,j3); 0/1 matmul is exact
    perm = np.zeros((M, M), np.float32)
    for j1 in range(m1):
        for j2 in range(m2):
            for j3 in range(m3):
                perm[(j3 * m2 + j2) * m1 + j1, (j1 * m2 + j2) * m3 + j3] = 1.0
    perm = jnp.asarray(perm)

    bias2 = bias.reshape(1, M).astype(jnp.float32)

    bt = B if B <= batch_tile else batch_tile
    assert B % bt == 0, "pad the batch to a multiple of the batch tile"
    grid = (B // bt,)

    kernel = functools.partial(
        _tt_linear_kernel,
        n1=n1, n2=n2, n3=n3, m1=m1, m2=m2, m3=m3, r1=r1, r2=r2)

    return pl.pallas_call(
        kernel,
        out_shape=jax.ShapeDtypeStruct((B, M), jnp.float32),
        grid=grid,
        in_specs=[
            pl.BlockSpec((bt, N), lambda i: (i, 0)),                 # activations (tiled)
            pl.BlockSpec((n1, r1, m1), lambda i: (0, 0, 0)),         # packed core 1
            pl.BlockSpec((n2, r2, m2 * r1), lambda i: (0, 0, 0)),    # packed core 2
            pl.BlockSpec((n3, m3 * r2), lambda i: (0, 0)),           # packed core 3
            pl.BlockSpec((M, M), lambda i: (0, 0)),                  # output permutation
            pl.BlockSpec((1, M), lambda i: (0, 0)),                  # bias
        ],
        out_specs=pl.BlockSpec((bt, M), lambda i: (i, 0)),
        scratch_shapes=[
            pltpu.VMEM((n2 * n3, n2 * m3 * r2), jnp.float32),        # W3 (16, 128)
            pltpu.VMEM((n2 * m3 * r2, m3 * m2 * r1), jnp.float32),   # W2 (128, 128)
            pltpu.VMEM((n1, m3 * m2 * r1, M), jnp.float32),          # W1 (n1, 128, M)
        ],
        compiler_params=pltpu.CompilerParams(
            dimension_semantics=("parallel",)),
    )(x.astype(jnp.float32), c1m, c2m, c3m, perm, bias2)


# ---------------------------------------------------------------------------
# Pure-JAX reference (mirrors torch: full() -> x @ full + bias)
# ---------------------------------------------------------------------------

def reference_forward(x, cores, bias):
    g1, g2, g3 = cores
    full6 = jnp.einsum('aijb,bklc,cmnd->ikmjln', g1, g2, g3)
    n1, n2, n3, m1, m2, m3 = full6.shape
    full = full6.reshape(n1 * n2 * n3, m1 * m2 * m3)
    return x @ full + bias[None, :]


# ---------------------------------------------------------------------------
# Demo
# ---------------------------------------------------------------------------

if __name__ == "__main__":
    # Module config: in_features=64, out_features=32, d=3, tt_rank=8, bias=True
    in_quant = (4, 4, 4)      # in_features  = 64  (stands in for t3.utils.auto_shape)
    out_quant = (2, 4, 4)     # out_features = 32
    tt_rank = 8
    B = 16                    # batch rows

    N = int(np.prod(in_quant))
    M = int(np.prod(out_quant))

    key = jax.random.PRNGKey(0)
    k1, k2, k3, kx = jax.random.split(key, 4)

    # deterministic glorot-like TT-core init (same shapes/ranks as t3.glorot_initializer)
    std = ((2.0 / (N + M)) ** (1.0 / 3) / tt_rank) ** 0.5
    cores = (
        std * jax.random.normal(k1, (1, in_quant[0], out_quant[0], tt_rank), jnp.float32),
        std * jax.random.normal(k2, (tt_rank, in_quant[1], out_quant[1], tt_rank), jnp.float32),
        std * jax.random.normal(k3, (tt_rank, in_quant[2], out_quant[2], 1), jnp.float32),
    )
    bias = 0.001 * jnp.ones((M,), jnp.float32)          # torch: 0.001 * ones(out_features)

    x = jax.random.normal(kx, (B, N), jnp.float32)

    out = tt_linear_forward(x, cores, bias)
    out = jax.block_until_ready(out)

    ref = reference_forward(x, cores, bias)
    assert out.shape == (B, M), out.shape
    np.testing.assert_allclose(np.asarray(out), np.asarray(ref), rtol=1e-3, atol=1e-5)

    print("KERNEL_OK")
</pallas_src>

<mosaic_0001>
module attributes {stable_mosaic.version = 11 : i64} {
  func.func @_tt_linear_kernel(%arg0: i32, %arg1: memref<16x64xf32, #tpu.memory_space<vmem>>, %arg2: memref<4x8x2xf32, #tpu.memory_space<vmem>>, %arg3: memref<4x8x32xf32, #tpu.memory_space<vmem>>, %arg4: memref<4x32xf32, #tpu.memory_space<vmem>>, %arg5: memref<32x32xf32, #tpu.memory_space<vmem>>, %arg6: memref<1x32xf32, #tpu.memory_space<vmem>>, %arg7: memref<16x32xf32, #tpu.memory_space<vmem>>, %arg8: memref<16x128xf32, #tpu.memory_space<vmem>>, %arg9: memref<128x128xf32, #tpu.memory_space<vmem>>, %arg10: memref<4x128x32xf32, #tpu.memory_space<vmem>>) attributes {dimension_semantics = [#tpu.dimension_semantics<parallel>], iteration_bounds = array<i64: 1>, scalar_prefetch = 0 : i64, scratch_operands = 3 : i64, tpu.core_type = #tpu.core_type<tc>, window_params = [{transform_indices = @transform_0, window_bounds = array<i64: 16, 64>}, {pipeline_mode = #tpu.pipeline_mode<synchronous>, transform_indices = @transform_1, window_bounds = array<i64: 4, 8, 2>}, {pipeline_mode = #tpu.pipeline_mode<synchronous>, transform_indices = @transform_2, window_bounds = array<i64: 4, 8, 32>}, {pipeline_mode = #tpu.pipeline_mode<synchronous>, transform_indices = @transform_3, window_bounds = array<i64: 4, 32>}, {pipeline_mode = #tpu.pipeline_mode<synchronous>, transform_indices = @transform_4, window_bounds = array<i64: 32, 32>}, {pipeline_mode = #tpu.pipeline_mode<synchronous>, transform_indices = @transform_5, window_bounds = array<i64: 1, 32>}, {transform_indices = @transform_6, window_bounds = array<i64: 16, 32>}]} {
    %cst = arith.constant 0.000000e+00 : f32
    %0 = vector.broadcast %cst : f32 to vector<16x128xf32>
    %c0 = arith.constant 0 : index
    %c0_0 = arith.constant 0 : index
    %1 = vector.load %arg8[%c0, %c0_0] : memref<16x128xf32, #tpu.memory_space<vmem>>, vector<16x128xf32>
    tpu.vector_store %arg8[%c0, %c0_0], %0 {strides = array<i32>} : memref<16x128xf32, #tpu.memory_space<vmem>>, vector<16x128xf32>,
    %cst_1 = arith.constant 0.000000e+00 : f32
    %2 = vector.broadcast %cst_1 : f32 to vector<128x128xf32>
    %c0_2 = arith.constant 0 : index
    %c0_3 = arith.constant 0 : index
    %3 = vector.load %arg9[%c0_2, %c0_3] : memref<128x128xf32, #tpu.memory_space<vmem>>, vector<128x128xf32>
    tpu.vector_store %arg9[%c0_2, %c0_3], %2 {strides = array<i32>} : memref<128x128xf32, #tpu.memory_space<vmem>>, vector<128x128xf32>,
    %cst_4 = arith.constant 0.000000e+00 : f32
    %4 = vector.broadcast %cst_4 : f32 to vector<4x128x32xf32>
    %c0_5 = arith.constant 0 : index
    %c0_6 = arith.constant 0 : index
    %c0_7 = arith.constant 0 : index
    %5 = vector.load %arg10[%c0_5, %c0_6, %c0_7] : memref<4x128x32xf32, #tpu.memory_space<vmem>>, vector<4x128x32xf32>
    tpu.vector_store %arg10[%c0_5, %c0_6, %c0_7], %4 {strides = array<i32>} : memref<4x128x32xf32, #tpu.memory_space<vmem>>, vector<4x128x32xf32>,
    %c0_8 = arith.constant 0 : index
    %c0_9 = arith.constant 0 : index
    %6 = vector.load %arg4[%c0_8, %c0_9] : memref<4x32xf32, #tpu.memory_space<vmem>>, vector<4x32xf32>
    %c0_10 = arith.constant 0 : index
    %c0_11 = arith.constant 0 : index
    %7 = vector.load %arg8[%c0_10, %c0_11] : memref<16x128xf32, #tpu.memory_space<vmem>>, vector<4x32xf32>
    tpu.vector_store %arg8[%c0_10, %c0_11], %6 {strides = array<i32>} : memref<16x128xf32, #tpu.memory_space<vmem>>, vector<4x32xf32>,
    %c4 = arith.constant 4 : index
    %c32 = arith.constant 32 : index
    %8 = vector.load %arg8[%c4, %c32] : memref<16x128xf32, #tpu.memory_space<vmem>>, vector<4x32xf32>
    tpu.vector_store %arg8[%c4, %c32], %6 {strides = array<i32>} : memref<16x128xf32, #tpu.memory_space<vmem>>, vector<4x32xf32>,
    %c8 = arith.constant 8 : index
    %c64 = arith.constant 64 : index
    %9 = vector.load %arg8[%c8, %c64] : memref<16x128xf32, #tpu.memory_space<vmem>>, vector<4x32xf32>
    tpu.vector_store %arg8[%c8, %c64], %6 {strides = array<i32>} : memref<16x128xf32, #tpu.memory_space<vmem>>, vector<4x32xf32>,
    %c12 = arith.constant 12 : index
    %c96 = arith.constant 96 : index
    %10 = vector.load %arg8[%c12, %c96] : memref<16x128xf32, #tpu.memory_space<vmem>>, vector<4x32xf32>
    tpu.vector_store %arg8[%c12, %c96], %6 {strides = array<i32>} : memref<16x128xf32, #tpu.memory_space<vmem>>, vector<4x32xf32>,
    %c0_12 = arith.constant 0 : index
    %c0_13 = arith.constant 0 : index
    %c0_14 = arith.constant 0 : index
    %11 = vector.load %arg3[%c0_12, %c0_13, %c0_14] : memref<4x8x32xf32, #tpu.memory_space<vmem>>, vector<1x8x32xf32>
    %12 = vector.shape_cast %11 : vector<1x8x32xf32> to vector<8x32xf32>
    %c0_15 = arith.constant 0 : index
    %c0_16 = arith.constant 0 : index
    %13 = vector.load %arg9[%c0_15, %c0_16] : memref<128x128xf32, #tpu.memory_space<vmem>>, vector<8x32xf32>
    tpu.vector_store %arg9[%c0_15, %c0_16], %12 {strides = array<i32>} : memref<128x128xf32, #tpu.memory_space<vmem>>, vector<8x32xf32>,
    %c8_17 = arith.constant 8 : index
    %c32_18 = arith.constant 32 : index
    %14 = vector.load %arg9[%c8_17, %c32_18] : memref<128x128xf32, #tpu.memory_space<vmem>>, vector<8x32xf32>
    tpu.vector_store %arg9[%c8_17, %c32_18], %12 {strides = array<i32>} : memref<128x128xf32, #tpu.memory_space<vmem>>, vector<8x32xf32>,
    %c16 = arith.constant 16 : index
    %c64_19 = arith.constant 64 : index
    %15 = vector.load %arg9[%c16, %c64_19] : memref<128x128xf32, #tpu.memory_space<vmem>>, vector<8x32xf32>
    tpu.vector_store %arg9[%c16, %c64_19], %12 {strides = array<i32>} : memref<128x128xf32, #tpu.memory_space<vmem>>, vector<8x32xf32>,
    %c24 = arith.constant 24 : index
    %c96_20 = arith.constant 96 : index
    %16 = vector.load %arg9[%c24, %c96_20] : memref<128x128xf32, #tpu.memory_space<vmem>>, vector<8x32xf32>
    tpu.vector_store %arg9[%c24, %c96_20], %12 {strides = array<i32>} : memref<128x128xf32, #tpu.memory_space<vmem>>, vector<8x32xf32>,
    %c1 = arith.constant 1 : index
    %c0_21 = arith.constant 0 : index
    %c0_22 = arith.constant 0 : index
    %17 = vector.load %arg3[%c1, %c0_21, %c0_22] : memref<4x8x32xf32, #tpu.memory_space<vmem>>, vector<1x8x32xf32>
    %18 = vector.shape_cast %17 : vector<1x8x32xf32> to vector<8x32xf32>
    %c32_23 = arith.constant 32 : index
    %c0_24 = arith.constant 0 : index
    %19 = vector.load %arg9[%c32_23, %c0_24] : memref<128x128xf32, #tpu.memory_space<vmem>>, vector<8x32xf32>
    tpu.vector_store %arg9[%c32_23, %c0_24], %18 {strides = array<i32>} : memref<128x128xf32, #tpu.memory_space<vmem>>, vector<8x32xf32>,
    %c40 = arith.constant 40 : index
    %c32_25 = arith.constant 32 : index
    %20 = vector.load %arg9[%c40, %c32_25] : memref<128x128xf32, #tpu.memory_space<vmem>>, vector<8x32xf32>
    tpu.vector_store %arg9[%c40, %c32_25], %18 {strides = array<i32>} : memref<128x128xf32, #tpu.memory_space<vmem>>, vector<8x32xf32>,
    %c48 = arith.constant 48 : index
    %c64_26 = arith.constant 64 : index
    %21 = vector.load %arg9[%c48, %c64_26] : memref<128x128xf32, #tpu.memory_space<vmem>>, vector<8x32xf32>
    tpu.vector_store %arg9[%c48, %c64_26], %18 {strides = array<i32>} : memref<128x128xf32, #tpu.memory_space<vmem>>, vector<8x32xf32>,
    %c56 = arith.constant 56 : index
    %c96_27 = arith.constant 96 : index
    %22 = vector.load %arg9[%c56, %c96_27] : memref<128x128xf32, #tpu.memory_space<vmem>>, vector<8x32xf32>
    tpu.vector_store %arg9[%c56, %c96_27], %18 {strides = array<i32>} : memref<128x128xf32, #tpu.memory_space<vmem>>, vector<8x32xf32>,
    %c2 = arith.constant 2 : index
    %c0_28 = arith.constant 0 : index
    %c0_29 = arith.constant 0 : index
    %23 = vector.load %arg3[%c2, %c0_28, %c0_29] : memref<4x8x32xf32, #tpu.memory_space<vmem>>, vector<1x8x32xf32>
    %24 = vector.shape_cast %23 : vector<1x8x32xf32> to vector<8x32xf32>
    %c64_30 = arith.constant 64 : index
    %c0_31 = arith.constant 0 : index
    %25 = vector.load %arg9[%c64_30, %c0_31] : memref<128x128xf32, #tpu.memory_space<vmem>>, vector<8x32xf32>
    tpu.vector_store %arg9[%c64_30, %c0_31], %24 {strides = array<i32>} : memref<128x128xf32, #tpu.memory_space<vmem>>, vector<8x32xf32>,
    %c72 = arith.constant 72 : index
    %c32_32 = arith.constant 32 : index
    %26 = vector.load %arg9[%c72, %c32_32] : memref<128x128xf32, #tpu.memory_space<vmem>>, vector<8x32xf32>
    tpu.vector_store %arg9[%c72, %c32_32], %24 {strides = array<i32>} : memref<128x128xf32, #tpu.memory_space<vmem>>, vector<8x32xf32>,
    %c80 = arith.constant 80 : index
    %c64_33 = arith.constant 64 : index
    %27 = vector.load %arg9[%c80, %c64_33] : memref<128x128xf32, #tpu.memory_space<vmem>>, vector<8x32xf32>
    tpu.vector_store %arg9[%c80, %c64_33], %24 {strides = array<i32>} : memref<128x128xf32, #tpu.memory_space<vmem>>, vector<8x32xf32>,
    %c88 = arith.constant 88 : index
    %c96_34 = arith.constant 96 : index
    %28 = vector.load %arg9[%c88, %c96_34] : memref<128x128xf32, #tpu.memory_space<vmem>>, vector<8x32xf32>
    tpu.vector_store %arg9[%c88, %c96_34], %24 {strides = array<i32>} : memref<128x128xf32, #tpu.memory_space<vmem>>, vector<8x32xf32>,
    %c3 = arith.constant 3 : index
    %c0_35 = arith.constant 0 : index
    %c0_36 = arith.constant 0 : index
    %29 = vector.load %arg3[%c3, %c0_35, %c0_36] : memref<4x8x32xf32, #tpu.memory_space<vmem>>, vector<1x8x32xf32>
    %30 = vector.shape_cast %29 : vector<1x8x32xf32> to vector<8x32xf32>
    %c96_37 = arith.constant 96 : index
    %c0_38 = arith.constant 0 : index
    %31 = vector.load %arg9[%c96_37, %c0_38] : memref<128x128xf32, #tpu.memory_space<vmem>>, vector<8x32xf32>
    tpu.vector_store %arg9[%c96_37, %c0_38], %30 {strides = array<i32>} : memref<128x128xf32, #tpu.memory_space<vmem>>, vector<8x32xf32>,
    %c104 = arith.constant 104 : index
    %c32_39 = arith.constant 32 : index
    %32 = vector.load %arg9[%c104, %c32_39] : memref<128x128xf32, #tpu.memory_space<vmem>>, vector<8x32xf32>
    tpu.vector_store %arg9[%c104, %c32_39], %30 {strides = array<i32>} : memref<128x128xf32, #tpu.memory_space<vmem>>, vector<8x32xf32>,
    %c112 = arith.constant 112 : index
    %c64_40 = arith.constant 64 : index
    %33 = vector.load %arg9[%c112, %c64_40] : memref<128x128xf32, #tpu.memory_space<vmem>>, vector<8x32xf32>
    tpu.vector_store %arg9[%c112, %c64_40], %30 {strides = array<i32>} : memref<128x128xf32, #tpu.memory_space<vmem>>, vector<8x32xf32>,
    %c120 = arith.constant 120 : index
    %c96_41 = arith.constant 96 : index
    %34 = vector.load %arg9[%c120, %c96_41] : memref<128x128xf32, #tpu.memory_space<vmem>>, vector<8x32xf32>
    tpu.vector_store %arg9[%c120, %c96_41], %30 {strides = array<i32>} : memref<128x128xf32, #tpu.memory_space<vmem>>, vector<8x32xf32>,
    %c0_42 = arith.constant 0 : index
    %c0_43 = arith.constant 0 : index
    %c0_44 = arith.constant 0 : index
    %35 = vector.load %arg2[%c0_42, %c0_43, %c0_44] : memref<4x8x2xf32, #tpu.memory_space<vmem>>, vector<1x8x2xf32>
    %36 = vector.shape_cast %35 : vector<1x8x2xf32> to vector<8x2xf32>
    %c0_45 = arith.constant 0 : index
    %c0_46 = arith.constant 0 : index
    %c0_47 = arith.constant 0 : index
    %37 = vector.load %arg10[%c0_45, %c0_46, %c0_47] : memref<4x128x32xf32, #tpu.memory_space<vmem>>, vector<1x8x2xf32>
    %38 = vector.shape_cast %37 : vector<1x8x2xf32> to vector<8x2xf32>
    %39 = vector.shape_cast %36 : vector<8x2xf32> to vector<1x8x2xf32>
    tpu.vector_store %arg10[%c0_45, %c0_46, %c0_47], %39 {strides = array<i32>} : memref<4x128x32xf32, #tpu.memory_space<vmem>>, vector<1x8x2xf32>,
    %c0_48 = arith.constant 0 : index
    %c8_49 = arith.constant 8 : index
    %c2_50 = arith.constant 2 : index
    %40 = vector.load %arg10[%c0_48, %c8_49, %c2_50] : memref<4x128x32xf32, #tpu.memory_space<vmem>>, vector<1x8x2xf32>
    %41 = vector.shape_cast %40 : vector<1x8x2xf32> to vector<8x2xf32>
    %42 = vector.shape_cast %36 : vector<8x2xf32> to vector<1x8x2xf32>
    tpu.vector_store %arg10[%c0_48, %c8_49, %c2_50], %42 {strides = array<i32>} : memref<4x128x32xf32, #tpu.memory_space<vmem>>, vector<1x8x2xf32>,
    %c0_51 = arith.constant 0 : index
    %c16_52 = arith.constant 16 : index
    %c4_53 = arith.constant 4 : index
    %43 = vector.load %arg10[%c0_51, %c16_52, %c4_53] : memref<4x128x32xf32, #tpu.memory_space<vmem>>, vector<1x8x2xf32>
    %44 = vector.shape_cast %43 : vector<1x8x2xf32> to vector<8x2xf32>
    %45 = vector.shape_cast %36 : vector<8x2xf32> to vector<1x8x2xf32>
    tpu.vector_store %arg10[%c0_51, %c16_52, %c4_53], %45 {strides = array<i32>} : memref<4x128x32xf32, #tpu.memory_space<vmem>>, vector<1x8x2xf32>,
    %c0_54 = arith.constant 0 : index
    %c24_55 = arith.constant 24 : index
    %c6 = arith.constant 6 : index
    %46 = vector.load %arg10[%c0_54, %c24_55, %c6] : memref<4x128x32xf32, #tpu.memory_space<vmem>>, vector<1x8x2xf32>
    %47 = vector.shape_cast %46 : vector<1x8x2xf32> to vector<8x2xf32>
    %48 = vector.shape_cast %36 : vector<8x2xf32> to vector<1x8x2xf32>
    tpu.vector_store %arg10[%c0_54, %c24_55, %c6], %48 {strides = array<i32>} : memref<4x128x32xf32, #tpu.memory_space<vmem>>, vector<1x8x2xf32>,
    %c0_56 = arith.constant 0 : index
    %c32_57 = arith.constant 32 : index
    %c8_58 = arith.constant 8 : index
    %49 = vector.load %arg10[%c0_56, %c32_57, %c8_58] : memref<4x128x32xf32, #tpu.memory_space<vmem>>, vector<1x8x2xf32>
    %50 = vector.shape_cast %49 : vector<1x8x2xf32> to vector<8x2xf32>
    %51 = vector.shape_cast %36 : vector<8x2xf32> to vector<1x8x2xf32>
    tpu.vector_store %arg10[%c0_56, %c32_57, %c8_58], %51 {strides = array<i32>} : memref<4x128x32xf32, #tpu.memory_space<vmem>>, vector<1x8x2xf32>,
    %c0_59 = arith.constant 0 : index
    %c40_60 = arith.constant 40 : index
    %c10 = arith.constant 10 : index
    %52 = vector.load %arg10[%c0_59, %c40_60, %c10] : memref<4x128x32xf32, #tpu.memory_space<vmem>>, vector<1x8x2xf32>
    %53 = vector.shape_cast %52 : vector<1x8x2xf32> to vector<8x2xf32>
    %54 = vector.shape_cast %36 : vector<8x2xf32> to vector<1x8x2xf32>
    tpu.vector_store %arg10[%c0_59, %c40_60, %c10], %54 {strides = array<i32>} : memref<4x128x32xf32, #tpu.memory_space<vmem>>, vector<1x8x2xf32>,
    %c0_61 = arith.constant 0 : index
    %c48_62 = arith.constant 48 : index
    %c12_63 = arith.constant 12 : index
    %55 = vector.load %arg10[%c0_61, %c48_62, %c12_63] : memref<4x128x32xf32, #tpu.memory_space<vmem>>, vector<1x8x2xf32>
    %56 = vector.shape_cast %55 : vector<1x8x2xf32> to vector<8x2xf32>
    %57 = vector.shape_cast %36 : vector<8x2xf32> to vector<1x8x2xf32>
    tpu.vector_store %arg10[%c0_61, %c48_62, %c12_63], %57 {strides = array<i32>} : memref<4x128x32xf32, #tpu.memory_space<vmem>>, vector<1x8x2xf32>,
    %c0_64 = arith.constant 0 : index
    %c56_65 = arith.constant 56 : index
    %c14 = arith.constant 14 : index
    %58 = vector.load %arg10[%c0_64, %c56_65, %c14] : memref<4x128x32xf32, #tpu.memory_space<vmem>>, vector<1x8x2xf32>
    %59 = vector.shape_cast %58 : vector<1x8x2xf32> to vector<8x2xf32>
    %60 = vector.shape_cast %36 : vector<8x2xf32> to vector<1x8x2xf32>
    tpu.vector_store %arg10[%c0_64, %c56_65, %c14], %60 {strides = array<i32>} : memref<4x128x32xf32, #tpu.memory_space<vmem>>, vector<1x8x2xf32>,
    %c0_66 = arith.constant 0 : index
    %c64_67 = arith.constant 64 : index
    %c16_68 = arith.constant 16 : index
    %61 = vector.load %arg10[%c0_66, %c64_67, %c16_68] : memref<4x128x32xf32, #tpu.memory_space<vmem>>, vector<1x8x2xf32>
    %62 = vector.shape_cast %61 : vector<1x8x2xf32> to vector<8x2xf32>
    %63 = vector.shape_cast %36 : vector<8x2xf32> to vector<1x8x2xf32>
    tpu.vector_store %arg10[%c0_66, %c64_67, %c16_68], %63 {strides = array<i32>} : memref<4x128x32xf32, #tpu.memory_space<vmem>>, vector<1x8x2xf32>,
    %c0_69 = arith.constant 0 : index
    %c72_70 = arith.constant 72 : index
    %c18 = arith.constant 18 : index
    %64 = vector.load %arg10[%c0_69, %c72_70, %c18] : memref<4x128x32xf32, #tpu.memory_space<vmem>>, vector<1x8x2xf32>
    %65 = vector.shape_cast %64 : vector<1x8x2xf32> to vector<8x2xf32>
    %66 = vector.shape_cast %36 : vector<8x2xf32> to vector<1x8x2xf32>
    tpu.vector_store %arg10[%c0_69, %c72_70, %c18], %66 {strides = array<i32>} : memref<4x128x32xf32, #tpu.memory_space<vmem>>, vector<1x8x2xf32>,
    %c0_71 = arith.constant 0 : index
    %c80_72 = arith.constant 80 : index
    %c20 = arith.constant 20 : index
    %67 = vector.load %arg10[%c0_71, %c80_72, %c20] : memref<4x128x32xf32, #tpu.memory_space<vmem>>, vector<1x8x2xf32>
    %68 = vector.shape_cast %67 : vector<1x8x2xf32> to vector<8x2xf32>
    %69 = vector.shape_cast %36 : vector<8x2xf32> to vector<1x8x2xf32>
    tpu.vector_store %arg10[%c0_71, %c80_72, %c20], %69 {strides = array<i32>} : memref<4x128x32xf32, #tpu.memory_space<vmem>>, vector<1x8x2xf32>,
    %c0_73 = arith.constant 0 : index
    %c88_74 = arith.constant 88 : index
    %c22 = arith.constant 22 : index
    %70 = vector.load %arg10[%c0_73, %c88_74, %c22] : memref<4x128x32xf32, #tpu.memory_space<vmem>>, vector<1x8x2xf32>
    %71 = vector.shape_cast %70 : vector<1x8x2xf32> to vector<8x2xf32>
    %72 = vector.shape_cast %36 : vector<8x2xf32> to vector<1x8x2xf32>
    tpu.vector_store %arg10[%c0_73, %c88_74, %c22], %72 {strides = array<i32>} : memref<4x128x32xf32, #tpu.memory_space<vmem>>, vector<1x8x2xf32>,
    %c0_75 = arith.constant 0 : index
    %c96_76 = arith.constant 96 : index
    %c24_77 = arith.constant 24 : index
    %73 = vector.load %arg10[%c0_75, %c96_76, %c24_77] : memref<4x128x32xf32, #tpu.memory_space<vmem>>, vector<1x8x2xf32>
    %74 = vector.shape_cast %73 : vector<1x8x2xf32> to vector<8x2xf32>
    %75 = vector.shape_cast %36 : vector<8x2xf32> to vector<1x8x2xf32>
    tpu.vector_store %arg10[%c0_75, %c96_76, %c24_77], %75 {strides = array<i32>} : memref<4x128x32xf32, #tpu.memory_space<vmem>>, vector<1x8x2xf32>,
    %c0_78 = arith.constant 0 : index
    %c104_79 = arith.constant 104 : index
    %c26 = arith.constant 26 : index
    %76 = vector.load %arg10[%c0_78, %c104_79, %c26] : memref<4x128x32xf32, #tpu.memory_space<vmem>>, vector<1x8x2xf32>
    %77 = vector.shape_cast %76 : vector<1x8x2xf32> to vector<8x2xf32>
    %78 = vector.shape_cast %36 : vector<8x2xf32> to vector<1x8x2xf32>
    tpu.vector_store %arg10[%c0_78, %c104_79, %c26], %78 {strides = array<i32>} : memref<4x128x32xf32, #tpu.memory_space<vmem>>, vector<1x8x2xf32>,
    %c0_80 = arith.constant 0 : index
    %c112_81 = arith.constant 112 : index
    %c28 = arith.constant 28 : index
    %79 = vector.load %arg10[%c0_80, %c112_81, %c28] : memref<4x128x32xf32, #tpu.memory_space<vmem>>, vector<1x8x2xf32>
    %80 = vector.shape_cast %79 : vector<1x8x2xf32> to vector<8x2xf32>
    %81 = vector.shape_cast %36 : vector<8x2xf32> to vector<1x8x2xf32>
    tpu.vector_store %arg10[%c0_80, %c112_81, %c28], %81 {strides = array<i32>} : memref<4x128x32xf32, #tpu.memory_space<vmem>>, vector<1x8x2xf32>,
    %c0_82 = arith.constant 0 : index
    %c120_83 = arith.constant 120 : index
    %c30 = arith.constant 30 : index
    %82 = vector.load %arg10[%c0_82, %c120_83, %c30] : memref<4x128x32xf32, #tpu.memory_space<vmem>>, vector<1x8x2xf32>
    %83 = vector.shape_cast %82 : vector<1x8x2xf32> to vector<8x2xf32>
    %84 = vector.shape_cast %36 : vector<8x2xf32> to vector<1x8x2xf32>
    tpu.vector_store %arg10[%c0_82, %c120_83, %c30], %84 {strides = array<i32>} : memref<4x128x32xf32, #tpu.memory_space<vmem>>, vector<1x8x2xf32>,
    %c1_84 = arith.constant 1 : index
    %c0_85 = arith.constant 0 : index
    %c0_86 = arith.constant 0 : index
    %85 = vector.load %arg2[%c1_84, %c0_85, %c0_86] : memref<4x8x2xf32, #tpu.memory_space<vmem>>, vector<1x8x2xf32>
    %86 = vector.shape_cast %85 : vector<1x8x2xf32> to vector<8x2xf32>
    %c1_87 = arith.constant 1 : index
    %c0_88 = arith.constant 0 : index
    %c0_89 = arith.constant 0 : index
    %87 = vector.load %arg10[%c1_87, %c0_88, %c0_89] : memref<4x128x32xf32, #tpu.memory_space<vmem>>, vector<1x8x2xf32>
    %88 = vector.shape_cast %87 : vector<1x8x2xf32> to vector<8x2xf32>
    %89 = vector.shape_cast %86 : vector<8x2xf32> to vector<1x8x2xf32>
    tpu.vector_store %arg10[%c1_87, %c0_88, %c0_89], %89 {strides = array<i32>} : memref<4x128x32xf32, #tpu.memory_space<vmem>>, vector<1x8x2xf32>,
    %c1_90 = arith.constant 1 : index
    %c8_91 = arith.constant 8 : index
    %c2_92 = arith.constant 2 : index
    %90 = vector.load %arg10[%c1_90, %c8_91, %c2_92] : memref<4x128x32xf32, #tpu.memory_space<vmem>>, vector<1x8x2xf32>
    %91 = vector.shape_cast %90 : vector<1x8x2xf32> to vector<8x2xf32>
    %92 = vector.shape_cast %86 : vector<8x2xf32> to vector<1x8x2xf32>
    tpu.vector_store %arg10[%c1_90, %c8_91, %c2_92], %92 {strides = array<i32>} : memref<4x128x32xf32, #tpu.memory_space<vmem>>, vector<1x8x2xf32>,
    %c1_93 = arith.constant 1 : index
    %c16_94 = arith.constant 16 : index
    %c4_95 = arith.constant 4 : index
    %93 = vector.load %arg10[%c1_93, %c16_94, %c4_95] : memref<4x128x32xf32, #tpu.memory_space<vmem>>, vector<1x8x2xf32>
    %94 = vector.shape_cast %93 : vector<1x8x2xf32> to vector<8x2xf32>
    %95 = vector.shape_cast %86 : vector<8x2xf32> to vector<1x8x2xf32>
    tpu.vector_store %arg10[%c1_93, %c16_94, %c4_95], %95 {strides = array<i32>} : memref<4x128x32xf32, #tpu.memory_space<vmem>>, vector<1x8x2xf32>,
    %c1_96 = arith.constant 1 : index
    %c24_97 = arith.constant 24 : index
    %c6_98 = arith.constant 6 : index
    %96 = vector.load %arg10[%c1_96, %c24_97, %c6_98] : memref<4x128x32xf32, #tpu.memory_space<vmem>>, vector<1x8x2xf32>
    %97 = vector.shape_cast %96 : vector<1x8x2xf32> to vector<8x2xf32>
    %98 = vector.shape_cast %86 : vector<8x2xf32> to vector<1x8x2xf32>
    tpu.vector_store %arg10[%c1_96, %c24_97, %c6_98], %98 {strides = array<i32>} : memref<4x128x32xf32, #tpu.memory_space<vmem>>, vector<1x8x2xf32>,
    %c1_99 = arith.constant 1 : index
    %c32_100 = arith.constant 32 : index
    %c8_101 = arith.constant 8 : index
    %99 = vector.load %arg10[%c1_99, %c32_100, %c8_101] : memref<4x128x32xf32, #tpu.memory_space<vmem>>, vector<1x8x2xf32>
    %100 = vector.shape_cast %99 : vector<1x8x2xf32> to vector<8x2xf32>
    %101 = vector.shape_cast %86 : vector<8x2xf32> to vector<1x8x2xf32>
    tpu.vector_store %arg10[%c1_99, %c32_100, %c8_101], %101 {strides = array<i32>} : memref<4x128x32xf32, #tpu.memory_space<vmem>>, vector<1x8x2xf32>,
    %c1_102 = arith.constant 1 : index
    %c40_103 = arith.constant 40 : index
    %c10_104 = arith.constant 10 : index
    %102 = vector.load %arg10[%c1_102, %c40_103, %c10_104] : memref<4x128x32xf32, #tpu.memory_space<vmem>>, vector<1x8x2xf32>
    %103 = vector.shape_cast %102 : vector<1x8x2xf32> to vector<8x2xf32>
    %104 = vector.shape_cast %86 : vector<8x2xf32> to vector<1x8x2xf32>
    tpu.vector_store %arg10[%c1_102, %c40_103, %c10_104], %104 {strides = array<i32>} : memref<4x128x32xf32, #tpu.memory_space<vmem>>, vector<1x8x2xf32>,
    %c1_105 = arith.constant 1 : index
    %c48_106 = arith.constant 48 : index
    %c12_107 = arith.constant 12 : index
    %105 = vector.load %arg10[%c1_105, %c48_106, %c12_107] : memref<4x128x32xf32, #tpu.memory_space<vmem>>, vector<1x8x2xf32>
    %106 = vector.shape_cast %105 : vector<1x8x2xf32> to vector<8x2xf32>
    %107 = vector.shape_cast %86 : vector<8x2xf32> to vector<1x8x2xf32>
    tpu.vector_store %arg10[%c1_105, %c48_106, %c12_107], %107 {strides = array<i32>} : memref<4x128x32xf32, #tpu.memory_space<vmem>>, vector<1x8x2xf32>,
    %c1_108 = arith.constant 1 : index
    %c56_109 = arith.constant 56 : index
    %c14_110 = arith.constant 14 : index
    %108 = vector.load %arg10[%c1_108, %c56_109, %c14_110] : memref<4x128x32xf32, #tpu.memory_space<vmem>>, vector<1x8x2xf32>
    %109 = vector.shape_cast %108 : vector<1x8x2xf32> to vector<8x2xf32>
    %110 = vector.shape_cast %86 : vector<8x2xf32> to vector<1x8x2xf32>
    tpu.vector_store %arg10[%c1_108, %c56_109, %c14_110], %110 {strides = array<i32>} : memref<4x128x32xf32, #tpu.memory_space<vmem>>, vector<1x8x2xf32>,
    %c1_111 = arith.constant 1 : index
    %c64_112 = arith.constant 64 : index
    %c16_113 = arith.constant 16 : index
    %111 = vector.load %arg10[%c1_111, %c64_112, %c16_113] : memref<4x128x32xf32, #tpu.memory_space<vmem>>, vector<1x8x2xf32>
    %112 = vector.shape_cast %111 : vector<1x8x2xf32> to vector<8x2xf32>
    %113 = vector.shape_cast %86 : vector<8x2xf32> to vector<1x8x2xf32>
    tpu.vector_store %arg10[%c1_111, %c64_112, %c16_113], %113 {strides = array<i32>} : memref<4x128x32xf32, #tpu.memory_space<vmem>>, vector<1x8x2xf32>,
    %c1_114 = arith.constant 1 : index
    %c72_115 = arith.constant 72 : index
    %c18_116 = arith.constant 18 : index
    %114 = vector.load %arg10[%c1_114, %c72_115, %c18_116] : memref<4x128x32xf32, #tpu.memory_space<vmem>>, vector<1x8x2xf32>
    %115 = vector.shape_cast %114 : vector<1x8x2xf32> to vector<8x2xf32>
    %116 = vector.shape_cast %86 : vector<8x2xf32> to vector<1x8x2xf32>
    tpu.vector_store %arg10[%c1_114, %c72_115, %c18_116], %116 {strides = array<i32>} : memref<4x128x32xf32, #tpu.memory_space<vmem>>, vector<1x8x2xf32>,
    %c1_117 = arith.constant 1 : index
    %c80_118 = arith.constant 80 : index
    %c20_119 = arith.constant 20 : index
    %117 = vector.load %arg10[%c1_117, %c80_118, %c20_119] : memref<4x128x32xf32, #tpu.memory_space<vmem>>, vector<1x8x2xf32>
    %118 = vector.shape_cast %117 : vector<1x8x2xf32> to vector<8x2xf32>
    %119 = vector.shape_cast %86 : vector<8x2xf32> to vector<1x8x2xf32>
    tpu.vector_store %arg10[%c1_117, %c80_118, %c20_119], %119 {strides = array<i32>} : memref<4x128x32xf32, #tpu.memory_space<vmem>>, vector<1x8x2xf32>,
    %c1_120 = arith.constant 1 : index
    %c88_121 = arith.constant 88 : index
    %c22_122 = arith.constant 22 : index
    %120 = vector.load %arg10[%c1_120, %c88_121, %c22_122] : memref<4x128x32xf32, #tpu.memory_space<vmem>>, vector<1x8x2xf32>
    %121 = vector.shape_cast %120 : vector<1x8x2xf32> to vector<8x2xf32>
    %122 = vector.shape_cast %86 : vector<8x2xf32> to vector<1x8x2xf32>
    tpu.vector_store %arg10[%c1_120, %c88_121, %c22_122], %122 {strides = array<i32>} : memref<4x128x32xf32, #tpu.memory_space<vmem>>, vector<1x8x2xf32>,
    %c1_123 = arith.constant 1 : index
    %c96_124 = arith.constant 96 : index
    %c24_125 = arith.constant 24 : index
    %123 = vector.load %arg10[%c1_123, %c96_124, %c24_125] : memref<4x128x32xf32, #tpu.memory_space<vmem>>, vector<1x8x2xf32>
    %124 = vector.shape_cast %123 : vector<1x8x2xf32> to vector<8x2xf32>
    %125 = vector.shape_cast %86 : vector<8x2xf32> to vector<1x8x2xf32>
    tpu.vector_store %arg10[%c1_123, %c96_124, %c24_125], %125 {strides = array<i32>} : memref<4x128x32xf32, #tpu.memory_space<vmem>>, vector<1x8x2xf32>,
    %c1_126 = arith.constant 1 : index
    %c104_127 = arith.constant 104 : index
    %c26_128 = arith.constant 26 : index
    %126 = vector.load %arg10[%c1_126, %c104_127, %c26_128] : memref<4x128x32xf32, #tpu.memory_space<vmem>>, vector<1x8x2xf32>
    %127 = vector.shape_cast %126 : vector<1x8x2xf32> to vector<8x2xf32>
    %128 = vector.shape_cast %86 : vector<8x2xf32> to vector<1x8x2xf32>
    tpu.vector_store %arg10[%c1_126, %c104_127, %c26_128], %128 {strides = array<i32>} : memref<4x128x32xf32, #tpu.memory_space<vmem>>, vector<1x8x2xf32>,
    %c1_129 = arith.constant 1 : index
    %c112_130 = arith.constant 112 : index
    %c28_131 = arith.constant 28 : index
    %129 = vector.load %arg10[%c1_129, %c112_130, %c28_131] : memref<4x128x32xf32, #tpu.memory_space<vmem>>, vector<1x8x2xf32>
    %130 = vector.shape_cast %129 : vector<1x8x2xf32> to vector<8x2xf32>
    %131 = vector.shape_cast %86 : vector<8x2xf32> to vector<1x8x2xf32>
    tpu.vector_store %arg10[%c1_129, %c112_130, %c28_131], %131 {strides = array<i32>} : memref<4x128x32xf32, #tpu.memory_space<vmem>>, vector<1x8x2xf32>,
    %c1_132 = arith.constant 1 : index
    %c120_133 = arith.constant 120 : index
    %c30_134 = arith.constant 30 : index
    %132 = vector.load %arg10[%c1_132, %c120_133, %c30_134] : memref<4x128x32xf32, #tpu.memory_space<vmem>>, vector<1x8x2xf32>
    %133 = vector.shape_cast %132 : vector<1x8x2xf32> to vector<8x2xf32>
    %134 = vector.shape_cast %86 : vector<8x2xf32> to vector<1x8x2xf32>
    tpu.vector_store %arg10[%c1_132, %c120_133, %c30_134], %134 {strides = array<i32>} : memref<4x128x32xf32, #tpu.memory_space<vmem>>, vector<1x8x2xf32>,
    %c2_135 = arith.constant 2 : index
    %c0_136 = arith.constant 0 : index
    %c0_137 = arith.constant 0 : index
    %135 = vector.load %arg2[%c2_135, %c0_136, %c0_137] : memref<4x8x2xf32, #tpu.memory_space<vmem>>, vector<1x8x2xf32>
    %136 = vector.shape_cast %135 : vector<1x8x2xf32> to vector<8x2xf32>
    %c2_138 = arith.constant 2 : index
    %c0_139 = arith.constant 0 : index
    %c0_140 = arith.constant 0 : index
    %137 = vector.load %arg10[%c2_138, %c0_139, %c0_140] : memref<4x128x32xf32, #tpu.memory_space<vmem>>, vector<1x8x2xf32>
    %138 = vector.shape_cast %137 : vector<1x8x2xf32> to vector<8x2xf32>
    %139 = vector.shape_cast %136 : vector<8x2xf32> to vector<1x8x2xf32>
    tpu.vector_store %arg10[%c2_138, %c0_139, %c0_140], %139 {strides = array<i32>} : memref<4x128x32xf32, #tpu.memory_space<vmem>>, vector<1x8x2xf32>,
    %c2_141 = arith.constant 2 : index
    %c8_142 = arith.constant 8 : index
    %c2_143 = arith.constant 2 : index
    %140 = vector.load %arg10[%c2_141, %c8_142, %c2_143] : memref<4x128x32xf32, #tpu.memory_space<vmem>>, vector<1x8x2xf32>
    %141 = vector.shape_cast %140 : vector<1x8x2xf32> to vector<8x2xf32>
    %142 = vector.shape_cast %136 : vector<8x2xf32> to vector<1x8x2xf32>
    tpu.vector_store %arg10[%c2_141, %c8_142, %c2_143], %142 {strides = array<i32>} : memref<4x128x32xf32, #tpu.memory_space<vmem>>, vector<1x8x2xf32>,
    %c2_144 = arith.constant 2 : index
    %c16_145 = arith.constant 16 : index
    %c4_146 = arith.constant 4 : index
    %143 = vector.load %arg10[%c2_144, %c16_145, %c4_146] : memref<4x128x32xf32, #tpu.memory_space<vmem>>, vector<1x8x2xf32>
    %144 = vector.shape_cast %143 : vector<1x8x2xf32> to vector<8x2xf32>
    %145 = vector.shape_cast %136 : vector<8x2xf32> to vector<1x8x2xf32>
    tpu.vector_store %arg10[%c2_144, %c16_145, %c4_146], %145 {strides = array<i32>} : memref<4x128x32xf32, #tpu.memory_space<vmem>>, vector<1x8x2xf32>,
    %c2_147 = arith.constant 2 : index
    %c24_148 = arith.constant 24 : index
    %c6_149 = arith.constant 6 : index
    %146 = vector.load %arg10[%c2_147, %c24_148, %c6_149] : memref<4x128x32xf32, #tpu.memory_space<vmem>>, vector<1x8x2xf32>
    %147 = vector.shape_cast %146 : vector<1x8x2xf32> to vector<8x2xf32>
    %148 = vector.shape_cast %136 : vector<8x2xf32> to vector<1x8x2xf32>
    tpu.vector_store %arg10[%c2_147, %c24_148, %c6_149], %148 {strides = array<i32>} : memref<4x128x32xf32, #tpu.memory_space<vmem>>, vector<1x8x2xf32>,
    %c2_150 = arith.constant 2 : index
    %c32_151 = arith.constant 32 : index
    %c8_152 = arith.constant 8 : index
    %149 = vector.load %arg10[%c2_150, %c32_151, %c8_152] : memref<4x128x32xf32, #tpu.memory_space<vmem>>, vector<1x8x2xf32>
    %150 = vector.shape_cast %149 : vector<1x8x2xf32> to vector<8x2xf32>
    %151 = vector.shape_cast %136 : vector<8x2xf32> to vector<1x8x2xf32>
    tpu.vector_store %arg10[%c2_150, %c32_151, %c8_152], %151 {strides = array<i32>} : memref<4x128x32xf32, #tpu.memory_space<vmem>>, vector<1x8x2xf32>,
    %c2_153 = arith.constant 2 : index
    %c40_154 = arith.constant 40 : index
    %c10_155 = arith.constant 10 : index
    %152 = vector.load %arg10[%c2_153, %c40_154, %c10_155] : memref<4x128x32xf32, #tpu.memory_space<vmem>>, vector<1x8x2xf32>
    %153 = vector.shape_cast %152 : vector<1x8x2xf32> to vector<8x2xf32>
    %154 = vector.shape_cast %136 : vector<8x2xf32> to vector<1x8x2xf32>
    tpu.vector_store %arg10[%c2_153, %c40_154, %c10_155], %154 {strides = array<i32>} : memref<4x128x32xf32, #tpu.memory_space<vmem>>, vector<1x8x2xf32>,
    %c2_156 = arith.constant 2 : index
    %c48_157 = arith.constant 48 : index
    %c12_158 = arith.constant 12 : index
    %155 = vector.load %arg10[%c2_156, %c48_157, %c12_158] : memref<4x128x32xf32, #tpu.memory_space<vmem>>, vector<1x8x2xf32>
    %156 = vector.shape_cast %155 : vector<1x8x2xf32> to vector<8x2xf32>
    %157 = vector.shape_cast %136 : vector<8x2xf32> to vector<1x8x2xf32>
    tpu.vector_store %arg10[%c2_156, %c48_157, %c12_158], %157 {strides = array<i32>} : memref<4x128x32xf32, #tpu.memory_space<vmem>>, vector<1x8x2xf32>,
    %c2_159 = arith.constant 2 : index
    %c56_160 = arith.constant 56 : index
    %c14_161 = arith.constant 14 : index
    %158 = vector.load %arg10[%c2_159, %c56_160, %c14_161] : memref<4x128x32xf32, #tpu.memory_space<vmem>>, vector<1x8x2xf32>
    %159 = vector.shape_cast %158 : vector<1x8x2xf32> to vector<8x2xf32>
    %160 = vector.shape_cast %136 : vector<8x2xf32> to vector<1x8x2xf32>
    tpu.vector_store %arg10[%c2_159, %c56_160, %c14_161], %160 {strides = array<i32>} : memref<4x128x32xf32, #tpu.memory_space<vmem>>, vector<1x8x2xf32>,
    %c2_162 = arith.constant 2 : index
    %c64_163 = arith.constant 64 : index
    %c16_164 = arith.constant 16 : index
    %161 = vector.load %arg10[%c2_162, %c64_163, %c16_164] : memref<4x128x32xf32, #tpu.memory_space<vmem>>, vector<1x8x2xf32>
    %162 = vector.shape_cast %161 : vector<1x8x2xf32> to vector<8x2xf32>
    %163 = vector.shape_cast %136 : vector<8x2xf32> to vector<1x8x2xf32>
    tpu.vector_store %arg10[%c2_162, %c64_163, %c16_164], %163 {strides = array<i32>} : memref<4x128x32xf32, #tpu.memory_space<vmem>>, vector<1x8x2xf32>,
    %c2_165 = arith.constant 2 : index
    %c72_166 = arith.constant 72 : index
    %c18_167 = arith.constant 18 : index
    %164 = vector.load %arg10[%c2_165, %c72_166, %c18_167] : memref<4x128x32xf32, #tpu.memory_space<vmem>>, vector<1x8x2xf32>
    %165 = vector.shape_cast %164 : vector<1x8x2xf32> to vector<8x2xf32>
    %166 = vector.shape_cast %136 : vector<8x2xf32> to vector<1x8x2xf32>
    tpu.vector_store %arg10[%c2_165, %c72_166, %c18_167], %166 {strides = array<i32>} : memref<4x128x32xf32, #tpu.memory_space<vmem>>, vector<1x8x2xf32>,
    %c2_168 = arith.constant 2 : index
    %c80_169 = arith.constant 80 : index
    %c20_170 = arith.constant 20 : index
    %167 = vector.load %arg10[%c2_168, %c80_169, %c20_170] : memref<4x128x32xf32, #tpu.memory_space<vmem>>, vector<1x8x2xf32>
    %168 = vector.shape_cast %167 : vector<1x8x2xf32> to vector<8x2xf32>
    %169 = vector.shape_cast %136 : vector<8x2xf32> to vector<1x8x2xf32>
    tpu.vector_store %arg10[%c2_168, %c80_169, %c20_170], %169 {strides = array<i32>} : memref<4x128x32xf32, #tpu.memory_space<vmem>>, vector<1x8x2xf32>,
    %c2_171 = arith.constant 2 : index
    %c88_172 = arith.constant 88 : index
    %c22_173 = arith.constant 22 : index
    %170 = vector.load %arg10[%c2_171, %c88_172, %c22_173] : memref<4x128x32xf32, #tpu.memory_space<vmem>>, vector<1x8x2xf32>
    %171 = vector.shape_cast %170 : vector<1x8x2xf32> to vector<8x2xf32>
    %172 = vector.shape_cast %136 : vector<8x2xf32> to vector<1x8x2xf32>
    tpu.vector_store %arg10[%c2_171, %c88_172, %c22_173], %172 {strides = array<i32>} : memref<4x128x32xf32, #tpu.memory_space<vmem>>, vector<1x8x2xf32>,
    %c2_174 = arith.constant 2 : index
    %c96_175 = arith.constant 96 : index
    %c24_176 = arith.constant 24 : index
    %173 = vector.load %arg10[%c2_174, %c96_175, %c24_176] : memref<4x128x32xf32, #tpu.memory_space<vmem>>, vector<1x8x2xf32>
    %174 = vector.shape_cast %173 : vector<1x8x2xf32> to vector<8x2xf32>
    %175 = vector.shape_cast %136 : vector<8x2xf32> to vector<1x8x2xf32>
    tpu.vector_store %arg10[%c2_174, %c96_175, %c24_176], %175 {strides = array<i32>} : memref<4x128x32xf32, #tpu.memory_space<vmem>>, vector<1x8x2xf32>,
    %c2_177 = arith.constant 2 : index
    %c104_178 = arith.constant 104 : index
    %c26_179 = arith.constant 26 : index
    %176 = vector.load %arg10[%c2_177, %c104_178, %c26_179] : memref<4x128x32xf32, #tpu.memory_space<vmem>>, vector<1x8x2xf32>
    %177 = vector.shape_cast %176 : vector<1x8x2xf32> to vector<8x2xf32>
    %178 = vector.shape_cast %136 : vector<8x2xf32> to vector<1x8x2xf32>
    tpu.vector_store %arg10[%c2_177, %c104_178, %c26_179], %178 {strides = array<i32>} : memref<4x128x32xf32, #tpu.memory_space<vmem>>, vector<1x8x2xf32>,
    %c2_180 = arith.constant 2 : index
    %c112_181 = arith.constant 112 : index
    %c28_182 = arith.constant 28 : index
    %179 = vector.load %arg10[%c2_180, %c112_181, %c28_182] : memref<4x128x32xf32, #tpu.memory_space<vmem>>, vector<1x8x2xf32>
    %180 = vector.shape_cast %179 : vector<1x8x2xf32> to vector<8x2xf32>
    %181 = vector.shape_cast %136 : vector<8x2xf32> to vector<1x8x2xf32>
    tpu.vector_store %arg10[%c2_180, %c112_181, %c28_182], %181 {strides = array<i32>} : memref<4x128x32xf32, #tpu.memory_space<vmem>>, vector<1x8x2xf32>,
    %c2_183 = arith.constant 2 : index
    %c120_184 = arith.constant 120 : index
    %c30_185 = arith.constant 30 : index
    %182 = vector.load %arg10[%c2_183, %c120_184, %c30_185] : memref<4x128x32xf32, #tpu.memory_space<vmem>>, vector<1x8x2xf32>
    %183 = vector.shape_cast %182 : vector<1x8x2xf32> to vector<8x2xf32>
    %184 = vector.shape_cast %136 : vector<8x2xf32> to vector<1x8x2xf32>
    tpu.vector_store %arg10[%c2_183, %c120_184, %c30_185], %184 {strides = array<i32>} : memref<4x128x32xf32, #tpu.memory_space<vmem>>, vector<1x8x2xf32>,
    %c3_186 = arith.constant 3 : index
    %c0_187 = arith.constant 0 : index
    %c0_188 = arith.constant 0 : index
    %185 = vector.load %arg2[%c3_186, %c0_187, %c0_188] : memref<4x8x2xf32, #tpu.memory_space<vmem>>, vector<1x8x2xf32>
    %186 = vector.shape_cast %185 : vector<1x8x2xf32> to vector<8x2xf32>
    %c3_189 = arith.constant 3 : index
    %c0_190 = arith.constant 0 : index
    %c0_191 = arith.constant 0 : index
    %187 = vector.load %arg10[%c3_189, %c0_190, %c0_191] : memref<4x128x32xf32, #tpu.memory_space<vmem>>, vector<1x8x2xf32>
    %188 = vector.shape_cast %187 : vector<1x8x2xf32> to vector<8x2xf32>
    %189 = vector.shape_cast %186 : vector<8x2xf32> to vector<1x8x2xf32>
    tpu.vector_store %arg10[%c3_189, %c0_190, %c0_191], %189 {strides = array<i32>} : memref<4x128x32xf32, #tpu.memory_space<vmem>>, vector<1x8x2xf32>,
    %c3_192 = arith.constant 3 : index
    %c8_193 = arith.constant 8 : index
    %c2_194 = arith.constant 2 : index
    %190 = vector.load %arg10[%c3_192, %c8_193, %c2_194] : memref<4x128x32xf32, #tpu.memory_space<vmem>>, vector<1x8x2xf32>
    %191 = vector.shape_cast %190 : vector<1x8x2xf32> to vector<8x2xf32>
    %192 = vector.shape_cast %186 : vector<8x2xf32> to vector<1x8x2xf32>
    tpu.vector_store %arg10[%c3_192, %c8_193, %c2_194], %192 {strides = array<i32>} : memref<4x128x32xf32, #tpu.memory_space<vmem>>, vector<1x8x2xf32>,
    %c3_195 = arith.constant 3 : index
    %c16_196 = arith.constant 16 : index
    %c4_197 = arith.constant 4 : index
    %193 = vector.load %arg10[%c3_195, %c16_196, %c4_197] : memref<4x128x32xf32, #tpu.memory_space<vmem>>, vector<1x8x2xf32>
    %194 = vector.shape_cast %193 : vector<1x8x2xf32> to vector<8x2xf32>
    %195 = vector.shape_cast %186 : vector<8x2xf32> to vector<1x8x2xf32>
    tpu.vector_store %arg10[%c3_195, %c16_196, %c4_197], %195 {strides = array<i32>} : memref<4x128x32xf32, #tpu.memory_space<vmem>>, vector<1x8x2xf32>,
    %c3_198 = arith.constant 3 : index
    %c24_199 = arith.constant 24 : index
    %c6_200 = arith.constant 6 : index
    %196 = vector.load %arg10[%c3_198, %c24_199, %c6_200] : memref<4x128x32xf32, #tpu.memory_space<vmem>>, vector<1x8x2xf32>
    %197 = vector.shape_cast %196 : vector<1x8x2xf32> to vector<8x2xf32>
    %198 = vector.shape_cast %186 : vector<8x2xf32> to vector<1x8x2xf32>
    tpu.vector_store %arg10[%c3_198, %c24_199, %c6_200], %198 {strides = array<i32>} : memref<4x128x32xf32, #tpu.memory_space<vmem>>, vector<1x8x2xf32>,
    %c3_201 = arith.constant 3 : index
    %c32_202 = arith.constant 32 : index
    %c8_203 = arith.constant 8 : index
    %199 = vector.load %arg10[%c3_201, %c32_202, %c8_203] : memref<4x128x32xf32, #tpu.memory_space<vmem>>, vector<1x8x2xf32>
    %200 = vector.shape_cast %199 : vector<1x8x2xf32> to vector<8x2xf32>
    %201 = vector.shape_cast %186 : vector<8x2xf32> to vector<1x8x2xf32>
    tpu.vector_store %arg10[%c3_201, %c32_202, %c8_203], %201 {strides = array<i32>} : memref<4x128x32xf32, #tpu.memory_space<vmem>>, vector<1x8x2xf32>,
    %c3_204 = arith.constant 3 : index
    %c40_205 = arith.constant 40 : index
    %c10_206 = arith.constant 10 : index
    %202 = vector.load %arg10[%c3_204, %c40_205, %c10_206] : memref<4x128x32xf32, #tpu.memory_space<vmem>>, vector<1x8x2xf32>
    %203 = vector.shape_cast %202 : vector<1x8x2xf32> to vector<8x2xf32>
    %204 = vector.shape_cast %186 : vector<8x2xf32> to vector<1x8x2xf32>
    tpu.vector_store %arg10[%c3_204, %c40_205, %c10_206], %204 {strides = array<i32>} : memref<4x128x32xf32, #tpu.memory_space<vmem>>, vector<1x8x2xf32>,
    %c3_207 = arith.constant 3 : index
    %c48_208 = arith.constant 48 : index
    %c12_209 = arith.constant 12 : index
    %205 = vector.load %arg10[%c3_207, %c48_208, %c12_209] : memref<4x128x32xf32, #tpu.memory_space<vmem>>, vector<1x8x2xf32>
    %206 = vector.shape_cast %205 : vector<1x8x2xf32> to vector<8x2xf32>
    %207 = vector.shape_cast %186 : vector<8x2xf32> to vector<1x8x2xf32>
    tpu.vector_store %arg10[%c3_207, %c48_208, %c12_209], %207 {strides = array<i32>} : memref<4x128x32xf32, #tpu.memory_space<vmem>>, vector<1x8x2xf32>,
    %c3_210 = arith.constant 3 : index
    %c56_211 = arith.constant 56 : index
    %c14_212 = arith.constant 14 : index
    %208 = vector.load %arg10[%c3_210, %c56_211, %c14_212] : memref<4x128x32xf32, #tpu.memory_space<vmem>>, vector<1x8x2xf32>
    %209 = vector.shape_cast %208 : vector<1x8x2xf32> to vector<8x2xf32>
    %210 = vector.shape_cast %186 : vector<8x2xf32> to vector<1x8x2xf32>
    tpu.vector_store %arg10[%c3_210, %c56_211, %c14_212], %210 {strides = array<i32>} : memref<4x128x32xf32, #tpu.memory_space<vmem>>, vector<1x8x2xf32>,
    %c3_213 = arith.constant 3 : index
    %c64_214 = arith.constant 64 : index
    %c16_215 = arith.constant 16 : index
    %211 = vector.load %arg10[%c3_213, %c64_214, %c16_215] : memref<4x128x32xf32, #tpu.memory_space<vmem>>, vector<1x8x2xf32>
    %212 = vector.shape_cast %211 : vector<1x8x2xf32> to vector<8x2xf32>
    %213 = vector.shape_cast %186 : vector<8x2xf32> to vector<1x8x2xf32>
    tpu.vector_store %arg10[%c3_213, %c64_214, %c16_215], %213 {strides = array<i32>} : memref<4x128x32xf32, #tpu.memory_space<vmem>>, vector<1x8x2xf32>,
    %c3_216 = arith.constant 3 : index
    %c72_217 = arith.constant 72 : index
    %c18_218 = arith.constant 18 : index
    %214 = vector.load %arg10[%c3_216, %c72_217, %c18_218] : memref<4x128x32xf32, #tpu.memory_space<vmem>>, vector<1x8x2xf32>
    %215 = vector.shape_cast %214 : vector<1x8x2xf32> to vector<8x2xf32>
    %216 = vector.shape_cast %186 : vector<8x2xf32> to vector<1x8x2xf32>
    tpu.vector_store %arg10[%c3_216, %c72_217, %c18_218], %216 {strides = array<i32>} : memref<4x128x32xf32, #tpu.memory_space<vmem>>, vector<1x8x2xf32>,
    %c3_219 = arith.constant 3 : index
    %c80_220 = arith.constant 80 : index
    %c20_221 = arith.constant 20 : index
    %217 = vector.load %arg10[%c3_219, %c80_220, %c20_221] : memref<4x128x32xf32, #tpu.memory_space<vmem>>, vector<1x8x2xf32>
    %218 = vector.shape_cast %217 : vector<1x8x2xf32> to vector<8x2xf32>
    %219 = vector.shape_cast %186 : vector<8x2xf32> to vector<1x8x2xf32>
    tpu.vector_store %arg10[%c3_219, %c80_220, %c20_221], %219 {strides = array<i32>} : memref<4x128x32xf32, #tpu.memory_space<vmem>>, vector<1x8x2xf32>,
    %c3_222 = arith.constant 3 : index
    %c88_223 = arith.constant 88 : index
    %c22_224 = arith.constant 22 : index
    %220 = vector.load %arg10[%c3_222, %c88_223, %c22_224] : memref<4x128x32xf32, #tpu.memory_space<vmem>>, vector<1x8x2xf32>
    %221 = vector.shape_cast %220 : vector<1x8x2xf32> to vector<8x2xf32>
    %222 = vector.shape_cast %186 : vector<8x2xf32> to vector<1x8x2xf32>
    tpu.vector_store %arg10[%c3_222, %c88_223, %c22_224], %222 {strides = array<i32>} : memref<4x128x32xf32, #tpu.memory_space<vmem>>, vector<1x8x2xf32>,
    %c3_225 = arith.constant 3 : index
    %c96_226 = arith.constant 96 : index
    %c24_227 = arith.constant 24 : index
    %223 = vector.load %arg10[%c3_225, %c96_226, %c24_227] : memref<4x128x32xf32, #tpu.memory_space<vmem>>, vector<1x8x2xf32>
    %224 = vector.shape_cast %223 : vector<1x8x2xf32> to vector<8x2xf32>
    %225 = vector.shape_cast %186 : vector<8x2xf32> to vector<1x8x2xf32>
    tpu.vector_store %arg10[%c3_225, %c96_226, %c24_227], %225 {strides = array<i32>} : memref<4x128x32xf32, #tpu.memory_space<vmem>>, vector<1x8x2xf32>,
    %c3_228 = arith.constant 3 : index
    %c104_229 = arith.constant 104 : index
    %c26_230 = arith.constant 26 : index
    %226 = vector.load %arg10[%c3_228, %c104_229, %c26_230] : memref<4x128x32xf32, #tpu.memory_space<vmem>>, vector<1x8x2xf32>
    %227 = vector.shape_cast %226 : vector<1x8x2xf32> to vector<8x2xf32>
    %228 = vector.shape_cast %186 : vector<8x2xf32> to vector<1x8x2xf32>
    tpu.vector_store %arg10[%c3_228, %c104_229, %c26_230], %228 {strides = array<i32>} : memref<4x128x32xf32, #tpu.memory_space<vmem>>, vector<1x8x2xf32>,
    %c3_231 = arith.constant 3 : index
    %c112_232 = arith.constant 112 : index
    %c28_233 = arith.constant 28 : index
    %229 = vector.load %arg10[%c3_231, %c112_232, %c28_233] : memref<4x128x32xf32, #tpu.memory_space<vmem>>, vector<1x8x2xf32>
    %230 = vector.shape_cast %229 : vector<1x8x2xf32> to vector<8x2xf32>
    %231 = vector.shape_cast %186 : vector<8x2xf32> to vector<1x8x2xf32>
    tpu.vector_store %arg10[%c3_231, %c112_232, %c28_233], %231 {strides = array<i32>} : memref<4x128x32xf32, #tpu.memory_space<vmem>>, vector<1x8x2xf32>,
    %c3_234 = arith.constant 3 : index
    %c120_235 = arith.constant 120 : index
    %c30_236 = arith.constant 30 : index
    %232 = vector.load %arg10[%c3_234, %c120_235, %c30_236] : memref<4x128x32xf32, #tpu.memory_space<vmem>>, vector<1x8x2xf32>
    %233 = vector.shape_cast %232 : vector<1x8x2xf32> to vector<8x2xf32>
    %234 = vector.shape_cast %186 : vector<8x2xf32> to vector<1x8x2xf32>
    tpu.vector_store %arg10[%c3_234, %c120_235, %c30_236], %234 {strides = array<i32>} : memref<4x128x32xf32, #tpu.memory_space<vmem>>, vector<1x8x2xf32>,
    %c0_237 = arith.constant 0 : index
    %c0_238 = arith.constant 0 : index
    %235 = vector.load %arg8[%c0_237, %c0_238] : memref<16x128xf32, #tpu.memory_space<vmem>>, vector<16x128xf32>
    %c0_239 = arith.constant 0 : index
    %c0_240 = arith.constant 0 : index
    %236 = vector.load %arg9[%c0_239, %c0_240] : memref<128x128xf32, #tpu.memory_space<vmem>>, vector<128x128xf32>
    %cst_241 = arith.constant 0.000000e+00 : f32
    %237 = vector.broadcast %cst_241 : f32 to vector<16x32xf32>
    %c0_242 = arith.constant 0 : index
    %c0_243 = arith.constant 0 : index
    %238 = vector.load %arg1[%c0_242, %c0_243] : memref<16x64xf32, #tpu.memory_space<vmem>>, vector<16x16xf32>
    %cst_244 = arith.constant dense<0.000000e+00> : vector<16x128xf32>
    %239 = tpu.matmul %238, %235, %cst_244 {dimension_numbers = #tpu.dot_dimension_numbers<[1], [0], [0], [1], [0, 0, 1, 1], [], []>} : vector<16x16xf32>, vector<16x128xf32>, vector<16x128xf32> -> vector<16x128xf32>
    %cst_245 = arith.constant dense<0.000000e+00> : vector<16x128xf32>
    %240 = tpu.matmul %239, %236, %cst_245 {dimension_numbers = #tpu.dot_dimension_numbers<[1], [0], [0], [1], [0, 0, 1, 1], [], []>} : vector<16x128xf32>, vector<128x128xf32>, vector<16x128xf32> -> vector<16x128xf32>
    %c0_246 = arith.constant 0 : index
    %c0_247 = arith.constant 0 : index
    %c0_248 = arith.constant 0 : index
    %241 = vector.load %arg10[%c0_246, %c0_247, %c0_248] : memref<4x128x32xf32, #tpu.memory_space<vmem>>, vector<1x128x32xf32>
    %242 = vector.shape_cast %241 : vector<1x128x32xf32> to vector<128x32xf32>
    %cst_249 = arith.constant dense<0.000000e+00> : vector<16x32xf32>
    %243 = tpu.matmul %240, %242, %cst_249 {dimension_numbers = #tpu.dot_dimension_numbers<[1], [0], [0], [1], [0, 0, 1, 1], [], []>} : vector<16x128xf32>, vector<128x32xf32>, vector<16x32xf32> -> vector<16x32xf32>
    %244 = arith.addf %237, %243 : vector<16x32xf32>
    %c0_250 = arith.constant 0 : index
    %c16_251 = arith.constant 16 : index
    %245 = vector.load %arg1[%c0_250, %c16_251] : memref<16x64xf32, #tpu.memory_space<vmem>>, vector<16x16xf32>
    %cst_252 = arith.constant dense<0.000000e+00> : vector<16x128xf32>
    %246 = tpu.matmul %245, %235, %cst_252 {dimension_numbers = #tpu.dot_dimension_numbers<[1], [0], [0], [1], [0, 0, 1, 1], [], []>} : vector<16x16xf32>, vector<16x128xf32>, vector<16x128xf32> -> vector<16x128xf32>
    %cst_253 = arith.constant dense<0.000000e+00> : vector<16x128xf32>
    %247 = tpu.matmul %246, %236, %cst_253 {dimension_numbers = #tpu.dot_dimension_numbers<[1], [0], [0], [1], [0, 0, 1, 1], [], []>} : vector<16x128xf32>, vector<128x128xf32>, vector<16x128xf32> -> vector<16x128xf32>
    %c1_254 = arith.constant 1 : index
    %c0_255 = arith.constant 0 : index
    %c0_256 = arith.constant 0 : index
    %248 = vector.load %arg10[%c1_254, %c0_255, %c0_256] : memref<4x128x32xf32, #tpu.memory_space<vmem>>, vector<1x128x32xf32>
    %249 = vector.shape_cast %248 : vector<1x128x32xf32> to vector<128x32xf32>
    %cst_257 = arith.constant dense<0.000000e+00> : vector<16x32xf32>
    %250 = tpu.matmul %247, %249, %cst_257 {dimension_numbers = #tpu.dot_dimension_numbers<[1], [0], [0], [1], [0, 0, 1, 1], [], []>} : vector<16x128xf32>, vector<128x32xf32>, vector<16x32xf32> -> vector<16x32xf32>
    %251 = arith.addf %244, %250 : vector<16x32xf32>
    %c0_258 = arith.constant 0 : index
    %c32_259 = arith.constant 32 : index
    %252 = vector.load %arg1[%c0_258, %c32_259] : memref<16x64xf32, #tpu.memory_space<vmem>>, vector<16x16xf32>
    %cst_260 = arith.constant dense<0.000000e+00> : vector<16x128xf32>
    %253 = tpu.matmul %252, %235, %cst_260 {dimension_numbers = #tpu.dot_dimension_numbers<[1], [0], [0], [1], [0, 0, 1, 1], [], []>} : vector<16x16xf32>, vector<16x128xf32>, vector<16x128xf32> -> vector<16x128xf32>
    %cst_261 = arith.constant dense<0.000000e+00> : vector<16x128xf32>
    %254 = tpu.matmul %253, %236, %cst_261 {dimension_numbers = #tpu.dot_dimension_numbers<[1], [0], [0], [1], [0, 0, 1, 1], [], []>} : vector<16x128xf32>, vector<128x128xf32>, vector<16x128xf32> -> vector<16x128xf32>
    %c2_262 = arith.constant 2 : index
    %c0_263 = arith.constant 0 : index
    %c0_264 = arith.constant 0 : index
    %255 = vector.load %arg10[%c2_262, %c0_263, %c0_264] : memref<4x128x32xf32, #tpu.memory_space<vmem>>, vector<1x128x32xf32>
    %256 = vector.shape_cast %255 : vector<1x128x32xf32> to vector<128x32xf32>
    %cst_265 = arith.constant dense<0.000000e+00> : vector<16x32xf32>
    %257 = tpu.matmul %254, %256, %cst_265 {dimension_numbers = #tpu.dot_dimension_numbers<[1], [0], [0], [1], [0, 0, 1, 1], [], []>} : vector<16x128xf32>, vector<128x32xf32>, vector<16x32xf32> -> vector<16x32xf32>
    %258 = arith.addf %251, %257 : vector<16x32xf32>
    %c0_266 = arith.constant 0 : index
    %c48_267 = arith.constant 48 : index
    %259 = vector.load %arg1[%c0_266, %c48_267] : memref<16x64xf32, #tpu.memory_space<vmem>>, vector<16x16xf32>
    %cst_268 = arith.constant dense<0.000000e+00> : vector<16x128xf32>
    %260 = tpu.matmul %259, %235, %cst_268 {dimension_numbers = #tpu.dot_dimension_numbers<[1], [0], [0], [1], [0, 0, 1, 1], [], []>} : vector<16x16xf32>, vector<16x128xf32>, vector<16x128xf32> -> vector<16x128xf32>
    %cst_269 = arith.constant dense<0.000000e+00> : vector<16x128xf32>
    %261 = tpu.matmul %260, %236, %cst_269 {dimension_numbers = #tpu.dot_dimension_numbers<[1], [0], [0], [1], [0, 0, 1, 1], [], []>} : vector<16x128xf32>, vector<128x128xf32>, vector<16x128xf32> -> vector<16x128xf32>
    %c3_270 = arith.constant 3 : index
    %c0_271 = arith.constant 0 : index
    %c0_272 = arith.constant 0 : index
    %262 = vector.load %arg10[%c3_270, %c0_271, %c0_272] : memref<4x128x32xf32, #tpu.memory_space<vmem>>, vector<1x128x32xf32>
    %263 = vector.shape_cast %262 : vector<1x128x32xf32> to vector<128x32xf32>
    %cst_273 = arith.constant dense<0.000000e+00> : vector<16x32xf32>
    %264 = tpu.matmul %261, %263, %cst_273 {dimension_numbers = #tpu.dot_dimension_numbers<[1], [0], [0], [1], [0, 0, 1, 1], [], []>} : vector<16x128xf32>, vector<128x32xf32>, vector<16x32xf32> -> vector<16x32xf32>
    %265 = arith.addf %258, %264 : vector<16x32xf32>
    %c0_274 = arith.constant 0 : index
    %c0_275 = arith.constant 0 : index
    %266 = vector.load %arg5[%c0_274, %c0_275] : memref<32x32xf32, #tpu.memory_space<vmem>>, vector<32x32xf32>
    %cst_276 = arith.constant dense<0.000000e+00> : vector<16x32xf32>
    %267 = tpu.matmul %265, %266, %cst_276 {dimension_numbers = #tpu.dot_dimension_numbers<[1], [0], [0], [1], [0, 0, 1, 1], [], []>} : vector<16x32xf32>, vector<32x32xf32>, vector<16x32xf32> -> vector<16x32xf32>
    %c0_277 = arith.constant 0 : index
    %c0_278 = arith.constant 0 : index
    %268 = vector.load %arg6[%c0_277, %c0_278] : memref<1x32xf32, #tpu.memory_space<vmem>>, vector<1x32xf32>
    %269 = vector.broadcast %268 : vector<1x32xf32> to vector<16x32xf32>
    %270 = arith.addf %267, %269 : vector<16x32xf32>
    %c0_279 = arith.constant 0 : index
    %c0_280 = arith.constant 0 : index
    %271 = vector.load %arg7[%c0_279, %c0_280] : memref<16x32xf32, #tpu.memory_space<vmem>>, vector<16x32xf32>
    tpu.vector_store %arg7[%c0_279, %c0_280], %270 {strides = array<i32>} : memref<16x32xf32, #tpu.memory_space<vmem>>, vector<16x32xf32>,
    return
  }
  func.func @transform_0(%arg0: i32) -> (i32, i32) {
    %c0_i32 = arith.constant 0 : i32
    %c0_i32_0 = arith.constant 0 : i32
    return %arg0, %c0_i32 : i32, i32
  }
  func.func @transform_1(%arg0: i32) -> (i32, i32, i32) {
    %c0_i32 = arith.constant 0 : i32
    %c0_i32_0 = arith.constant 0 : i32
    %c0_i32_1 = arith.constant 0 : i32
    %c0_i32_2 = arith.constant 0 : i32
    return %c0_i32, %c0_i32_0, %c0_i32_1 : i32, i32, i32
  }
  func.func @transform_2(%arg0: i32) -> (i32, i32, i32) {
    %c0_i32 = arith.constant 0 : i32
    %c0_i32_0 = arith.constant 0 : i32
    %c0_i32_1 = arith.constant 0 : i32
    %c0_i32_2 = arith.constant 0 : i32
    return %c0_i32, %c0_i32_0, %c0_i32_1 : i32, i32, i32
  }
  func.func @transform_3(%arg0: i32) -> (i32, i32) {
    %c0_i32 = arith.constant 0 : i32
    %c0_i32_0 = arith.constant 0 : i32
    %c0_i32_1 = arith.constant 0 : i32
    return %c0_i32, %c0_i32_0 : i32, i32
  }
  func.func @transform_4(%arg0: i32) -> (i32, i32) {
    %c0_i32 = arith.constant 0 : i32
    %c0_i32_0 = arith.constant 0 : i32
    %c0_i32_1 = arith.constant 0 : i32
    return %c0_i32, %c0_i32_0 : i32, i32
  }
  func.func @transform_5(%arg0: i32) -> (i32, i32) {
    %c0_i32 = arith.constant 0 : i32
    %c0_i32_0 = arith.constant 0 : i32
    %c0_i32_1 = arith.constant 0 : i32
    return %c0_i32, %c0_i32_0 : i32, i32
  }
  func.func @transform_6(%arg0: i32) -> (i32, i32) {
    %c0_i32 = arith.constant 0 : i32
    %c0_i32_0 = arith.constant 0 : i32
    return %arg0, %c0_i32 : i32, i32
  }
}

</mosaic_0001>

<bundles_post_ra>
// kernel: tpu_custom_call.1
= control target key start
LH: loop header
LB: loop body
LE: loop exit
PB: predicated region body
PF: predicated region fallthrough
CT: control target
= control target key end

     0   :  { %11 = vsyncpa [#allocation6], 0  ;;  %s3064_s0 = inlined_call_operand.hbm [shape: f32[16,64], index: 0, kind: input, shape index: {}]   ;;  %s3065_s1 = inlined_call_operand.vmem [shape: f32[4,8,2], index: 1, kind: input, shape index: {}]   ;;  %s3066_s2 = inlined_call_operand.vmem [shape: f32[4,8,32], index: 2, kind: input, shape index: {}]   ;;  %s3067_s3 = inlined_call_operand.vmem [shape: f32[4,32], index: 3, kind: input, shape index: {}]   ;;  %s3068_s4 = inlined_call_operand.hbm [shape: f32[32,32], index: 4, kind: input, shape index: {}]   ;;  %s3069_s5 = inlined_call_operand.vmem [shape: f32[1,32], index: 5, kind: input, shape index: {}]   ;;  %s3070_s6 = inlined_call_operand.hbm [shape: f32[16,32], index: 6, kind: output, shape index: {}]  }
   0x1   :  { %12 = vsyncpa [#allocation9], 0 }
   0x2   :  { %13 = vsyncpa [#allocation7], 0  ;;  %s2510_s21 = smov [#allocation5]   ;;  %s2438_s25 = scalar_lea.hbm %s3064_s0, 256 }
   0x3   :  { %s19_s22 = sshll.u32 %s2510_s21, 4  ;;  %p2439_p0 = scmp.ne.s32.totalorder %s3064_s0, %s2438_s25  ;;  %s20_s22 = int_to_ptr.vmem [resolvable:$true] %s19_s22 }
   0x4   :  { %p2442_p1 = scmp.lt.u32.totalorder %s2438_s25, %s3064_s0 }
   0x6   :  { %p2444_p2 = pnand %p2442_p1, %p2439_p0 }
   0x8   :  { %2447 = shalt.err (!%p2444_p2)
}
   0x9   :  { %s2448_s30 = scalar_lea.vmem %s20_s22, 256  ;;  %p2453_p4 = scmp.lt.s32.totalorder %s20_s22, %s20_s22 }
   0xa   :  { %p2449_p3 = scmp.ne.s32.totalorder %s20_s22, %s2448_s30  ;;  %p2454_p5 = scmp.lt.s32.totalorder %s2448_s30, %s2448_s30 }
   0xc   :  { %p2455_p6 = por %p2454_p5, %p2453_p4 }
   0xe   :  { %p2456_p7 = pnand %p2455_p6, %p2449_p3 }
  0x10   :  { %2459 = shalt.err (!%p2456_p7)
}
  0x11   :  { %s2511_s7 = smov 128   ;;  %s2512_s8 = smov 8  }
  0x12   :  { %25 = dma.hbm_to_vmem [thread:$0]  %s3064_s0, 256, %s20_s22, [#allocation6], %s2511_s7, %s2511_s7, %s2512_s8  }
  0x13   :  { %s2513_s11 = smov [#allocation8]   ;;  %s2460_s15 = scalar_lea.hbm %s3068_s4, 512 }
  0x14   :  { %s37_s12 = sshll.u32 %s2513_s11, 4  ;;  %p2461_p8 = scmp.ne.s32.totalorder %s3068_s4, %s2460_s15  ;;  %s38_s12 = int_to_ptr.vmem [resolvable:$true] %s37_s12 }
  0x15   :  { %p2464_p9 = scmp.lt.u32.totalorder %s2460_s15, %s3068_s4 }
  0x17   :  { %p2466_p10 = pnand %p2464_p9, %p2461_p8 }
  0x19   :  { %2469 = shalt.err (!%p2466_p10)
}
  0x1a   :  { %s2470_s20 = scalar_lea.vmem %s38_s12, 512  ;;  %p2475_p12 = scmp.lt.s32.totalorder %s38_s12, %s38_s12 }
  0x1b   :  { %p2471_p11 = scmp.ne.s32.totalorder %s38_s12, %s2470_s20  ;;  %p2476_p13 = scmp.lt.s32.totalorder %s2470_s20, %s2470_s20 }
  0x1d   :  { %p2477_p0 = por %p2476_p13, %p2475_p12 }
  0x1f   :  { %p2478_p1 = pnand %p2477_p0, %p2471_p11 }
  0x21   :  { %2481 = shalt.err (!%p2478_p1)
}
  0x22   :  { %43 = dma.hbm_to_vmem [thread:$0]  %s3068_s4, 512, %s38_s12, [#allocation9], %s2511_s7, %s2511_s7, %s2512_s8  }
  0x23   :  { %2504 = dma.done.wait [#allocation6], 256  }
  0x24   :  { %2505 = vsyncadd [#allocation6], 4294967040 }
  0x25   :  { %2506 = dma.done.wait [#allocation9], 512  }
  0x26   :  { %2507 = vsyncadd [#allocation9], 4294966784  ;;  %v2514_v0 = vmov 0.0   ;;  %vm3071_vm0 = vcmask 261120   ;;  %vm136_vm1 = vcmask 257024   ;;  %v154_v2 = vld [vmem:[%s3066_s2] sm:$0xff] }
  0x27   :  { %52 = vst [vmem:[#allocation2] sm:$0xff] %v2514_v0  ;;  %53 = vst [vmem:[#allocation2 + $0x8] sm:$0xff] %v2514_v0  ;;  %v135_v1 = vld [vmem:[%s3067_s3] sm:$0xf]  ;;  %v1625_v3 = vld [vmem:[%s3066_s2 + $0x8] sm:$0xff]  ;;  %s2515_s27 = smov 96  }
  0x28   :  { %54 = vst [vmem:[#allocation3] sm:$0xff] %v2514_v0  ;;  %55 = vst [vmem:[#allocation3 + $0x8] sm:$0xff] %v2514_v0  ;;  %149 = vrot.lane.b32.xlu1 %v135_v1, %s2515_s27  ;;  %s2516_s28 = smov 32   ;;  %v1626_v4 = vld [vmem:[%s3066_s2 + $0x10] sm:$0xff]  ;;  %v1627_v5 = vld [vmem:[%s3066_s2 + $0x18] sm:$0xff]  ;;  %vm3072_vm2 = vcmask 130048  }
  0x29   :  { %56 = vst [vmem:[#allocation3 + $0x10] sm:$0xff] %v2514_v0  ;;  %57 = vst [vmem:[#allocation3 + $0x18] sm:$0xff] %v2514_v0  ;;  %139 = vrot.lane.b32.xlu0 %v135_v1, %s2516_s28  ;;  %v2766_v6 = vld [vmem:[#allocation5] sm:$0xff]  ;;  %s2517_s10 = smov 64   ;;  %v2774_v7 = vld [vmem:[#allocation5 + $0x8] sm:$0xff]  ;;  %s2518_s2 = smov 112  }
  0x2a   :  { %58 = vst [vmem:[#allocation3 + $0x20] sm:$0xff] %v2514_v0  ;;  %59 = vst [vmem:[#allocation3 + $0x28] sm:$0xff] %v2514_v0  ;;  %1812 = vmatprep.mubr.msk.f32.mxu1 %vm3072_vm2, %v2766_v6  ;;  %vm152_vm3 = vcmask 1044224   ;;  %vm142_vm4 = vcmask 519424   ;;  %vm160_vm5 = vcmask 523520   ;;  %vm147_vm6 = vcmask 781824  }
  0x2b   :  { %60 = vst [vmem:[#allocation3 + $0x30] sm:$0xff] %v2514_v0  ;;  %61 = vst [vmem:[#allocation3 + $0x38] sm:$0xff] %v2514_v0  ;;  %vm170_vm7 = vcmask 1048320   ;;  %vm165_vm8 = vcmask 785920   ;;  %s2519_s11 = smov 80   ;;  %v1628_v54 = vld [vmem:[%s3065_s1 + $0x8] sm:$0xff] }
  0x2c   :  { %62 = vst [vmem:[#allocation3 + $0x40] sm:$0xff] %v2514_v0  ;;  %63 = vst [vmem:[#allocation3 + $0x48] sm:$0xff] %v2514_v0  ;;  %157 = vrot.lane.b32.xlu1 %v154_v2, %s2516_s28  ;;  %v220_v55 = vld [vmem:[%s3065_s1] sm:$0xff]  ;;  %vm3073_vm9 = vcmask 15360   ;;  %s2520_s16 = smov 2   ;;  %s2521_s17 = smov 4  }
  0x2d   :  { %64 = vst [vmem:[#allocation3 + $0x50] sm:$0xff] %v2514_v0  ;;  %65 = vst [vmem:[#allocation3 + $0x58] sm:$0xff] %v2514_v0  ;;  %144 = vrot.lane.b32.xlu0 %v135_v1, %s2517_s10  ;;  %s2522_s18 = smov 6   ;;  %s2523_s19 = smov 10   ;;  %vm227_vm10 = vcmask 31760   ;;  %vm232_vm11 = vcmask 48160  }
  0x2e   :  { %66 = vst [vmem:[#allocation3 + $0x60] sm:$0xff] %v2514_v0  ;;  %67 = vst [vmem:[#allocation3 + $0x68] sm:$0xff] %v2514_v0  ;;  %s2524_s20 = smov 12   ;;  %s2525_s0 = smov 14   ;;  %vm237_vm12 = vcmask 64560   ;;  %vm242_vm13 = vcmask 80960  }
  0x2f   :  { %68 = vst [vmem:[#allocation3 + $0x70] sm:$0xff] %v2514_v0  ;;  %69 = vst [vmem:[#allocation3 + $0x78] sm:$0xff] %v2514_v0  ;;  %s2526_s21 = smov 16   ;;  %s2527_s4 = smov 18   ;;  %vm247_vm14 = vcmask 97360   ;;  %vm252_vm15 = vcmask 113760  }
  0x30   :  { %71 = vst.msk [vmem:[#allocation4] sm:$0xff] %vm3071_vm0, %v2514_v0  ;;  %72 = vst.msk [vmem:[#allocation4 + $0x8] sm:$0xff] %vm3071_vm0, %v2514_v0  ;;  %167 = vrot.lane.b32.xlu1 %v154_v2, %s2515_s27  ;;  %s2528_s22 = smov 20   ;;  %s2529_s23 = smov 22  }
  0x31   :  { %73 = vst.msk [vmem:[#allocation4 + $0x10] sm:$0xff] %vm3071_vm0, %v2514_v0  ;;  %74 = vst.msk [vmem:[#allocation4 + $0x18] sm:$0xff] %vm3071_vm0, %v2514_v0  ;;  %162 = vrot.lane.b32.xlu0 %v154_v2, %s2517_s10  ;;  %s2530_s24 = smov 24   ;;  %s2531_s25 = smov 26  }
  0x32   :  { %75 = vst.msk [vmem:[#allocation4 + $0x20] sm:$0xff] %vm3071_vm0, %v2514_v0  ;;  %76 = vst.msk [vmem:[#allocation4 + $0x28] sm:$0xff] %vm3071_vm0, %v2514_v0  ;;  %s2532_s26 = smov 28  }
  0x33   :  { %77 = vst.msk [vmem:[#allocation4 + $0x30] sm:$0xff] %vm3071_vm0, %v2514_v0  ;;  %78 = vst.msk [vmem:[#allocation4 + $0x38] sm:$0xff] %vm3071_vm0, %v2514_v0 }
  0x34   :  { %79 = vst.msk [vmem:[#allocation4 + $0x40] sm:$0xff] %vm3071_vm0, %v2514_v0  ;;  %80 = vst.msk [vmem:[#allocation4 + $0x48] sm:$0xff] %vm3071_vm0, %v2514_v0  ;;  %180 = vrot.lane.b32.xlu1 %v1625_v3, %s2517_s10 }
  0x35   :  { %81 = vst.msk [vmem:[#allocation4 + $0x50] sm:$0xff] %vm3071_vm0, %v2514_v0  ;;  %82 = vst.msk [vmem:[#allocation4 + $0x58] sm:$0xff] %vm3071_vm0, %v2514_v0  ;;  %176 = vrot.lane.b32.xlu0 %v1625_v3, %s2516_s28 }
  0x36   :  { %83 = vst.msk [vmem:[#allocation4 + $0x60] sm:$0xff] %vm3071_vm0, %v2514_v0  ;;  %84 = vst.msk [vmem:[#allocation4 + $0x68] sm:$0xff] %vm3071_vm0, %v2514_v0 }
  0x37   :  { %85 = vst.msk [vmem:[#allocation4 + $0x70] sm:$0xff] %vm3071_vm0, %v2514_v0  ;;  %86 = vst.msk [vmem:[#allocation4 + $0x78] sm:$0xff] %vm3071_vm0, %v2514_v0 }
  0x38   :  { %87 = vst.msk [vmem:[#allocation4 + $0x80] sm:$0xff] %vm3071_vm0, %v2514_v0  ;;  %88 = vst.msk [vmem:[#allocation4 + $0x88] sm:$0xff] %vm3071_vm0, %v2514_v0  ;;  %192 = vrot.lane.b32.xlu1 %v1626_v4, %s2516_s28 }
  0x39   :  { %89 = vst.msk [vmem:[#allocation4 + $0x90] sm:$0xff] %vm3071_vm0, %v2514_v0  ;;  %90 = vst.msk [vmem:[#allocation4 + $0x98] sm:$0xff] %vm3071_vm0, %v2514_v0  ;;  %184 = vrot.lane.b32.xlu0 %v1625_v3, %s2515_s27 }
  0x3a   :  { %91 = vst.msk [vmem:[#allocation4 + $0xa0] sm:$0xff] %vm3071_vm0, %v2514_v0  ;;  %92 = vst.msk [vmem:[#allocation4 + $0xa8] sm:$0xff] %vm3071_vm0, %v2514_v0 }
  0x3b   :  { %93 = vst.msk [vmem:[#allocation4 + $0xb0] sm:$0xff] %vm3071_vm0, %v2514_v0  ;;  %94 = vst.msk [vmem:[#allocation4 + $0xb8] sm:$0xff] %vm3071_vm0, %v2514_v0 }
  0x3c   :  { %95 = vst.msk [vmem:[#allocation4 + $0xc0] sm:$0xff] %vm3071_vm0, %v2514_v0  ;;  %96 = vst.msk [vmem:[#allocation4 + $0xc8] sm:$0xff] %vm3071_vm0, %v2514_v0  ;;  %200 = vrot.lane.b32.xlu1 %v1626_v4, %s2515_s27 }
  0x3d   :  { %97 = vst.msk [vmem:[#allocation4 + $0xd0] sm:$0xff] %vm3071_vm0, %v2514_v0  ;;  %98 = vst.msk [vmem:[#allocation4 + $0xd8] sm:$0xff] %vm3071_vm0, %v2514_v0  ;;  %196 = vrot.lane.b32.xlu0 %v1626_v4, %s2517_s10 }
  0x3e   :  { %99 = vst.msk [vmem:[#allocation4 + $0xe0] sm:$0xff] %vm3071_vm0, %v2514_v0  ;;  %100 = vst.msk [vmem:[#allocation4 + $0xe8] sm:$0xff] %vm3071_vm0, %v2514_v0 }
  0x3f   :  { %101 = vst.msk [vmem:[#allocation4 + $0xf0] sm:$0xff] %vm3071_vm0, %v2514_v0  ;;  %102 = vst.msk [vmem:[#allocation4 + $0xf8] sm:$0xff] %vm3071_vm0, %v2514_v0 }
  0x40   :  { %103 = vst.msk [vmem:[#allocation4 + $0x100] sm:$0xff] %vm3071_vm0, %v2514_v0  ;;  %104 = vst.msk [vmem:[#allocation4 + $0x108] sm:$0xff] %vm3071_vm0, %v2514_v0  ;;  %212 = vrot.lane.b32.xlu1 %v1627_v5, %s2517_s10  ;;  %s2534_s10 = smov [#allocation10]  }
  0x41   :  { %105 = vst.msk [vmem:[#allocation4 + $0x110] sm:$0xff] %vm3071_vm0, %v2514_v0  ;;  %106 = vst.msk [vmem:[#allocation4 + $0x118] sm:$0xff] %vm3071_vm0, %v2514_v0  ;;  %208 = vrot.lane.b32.xlu0 %v1627_v5, %s2516_s28 }
  0x42   :  { %107 = vst.msk [vmem:[#allocation4 + $0x120] sm:$0xff] %vm3071_vm0, %v2514_v0  ;;  %108 = vst.msk [vmem:[#allocation4 + $0x128] sm:$0xff] %vm3071_vm0, %v2514_v0 }
  0x43   :  { %109 = vst.msk [vmem:[#allocation4 + $0x130] sm:$0xff] %vm3071_vm0, %v2514_v0  ;;  %110 = vst.msk [vmem:[#allocation4 + $0x138] sm:$0xff] %vm3071_vm0, %v2514_v0 }
  0x44   :  { %111 = vst.msk [vmem:[#allocation4 + $0x140] sm:$0xff] %vm3071_vm0, %v2514_v0  ;;  %112 = vst.msk [vmem:[#allocation4 + $0x148] sm:$0xff] %vm3071_vm0, %v2514_v0  ;;  %687 = vrot.lane.b32.xlu1 %v2766_v6, %s2518_s2 }
  0x45   :  { %113 = vst.msk [vmem:[#allocation4 + $0x150] sm:$0xff] %vm3071_vm0, %v2514_v0  ;;  %114 = vst.msk [vmem:[#allocation4 + $0x158] sm:$0xff] %vm3071_vm0, %v2514_v0  ;;  %216 = vrot.lane.b32.xlu0 %v1627_v5, %s2515_s27 }
  0x46   :  { %115 = vst.msk [vmem:[#allocation4 + $0x160] sm:$0xff] %vm3071_vm0, %v2514_v0  ;;  %116 = vst.msk [vmem:[#allocation4 + $0x168] sm:$0xff] %vm3071_vm0, %v2514_v0 }
  0x47   :  { %117 = vst.msk [vmem:[#allocation4 + $0x170] sm:$0xff] %vm3071_vm0, %v2514_v0  ;;  %118 = vst.msk [vmem:[#allocation4 + $0x178] sm:$0xff] %vm3071_vm0, %v2514_v0 }
  0x48   :  { %119 = vst.msk [vmem:[#allocation4 + $0x180] sm:$0xff] %vm3071_vm0, %v2514_v0  ;;  %120 = vst.msk [vmem:[#allocation4 + $0x188] sm:$0xff] %vm3071_vm0, %v2514_v0  ;;  %1011 = vrot.lane.b32.xlu1 %v2766_v6, %s2515_s27 }
  0x49   :  { %121 = vst.msk [vmem:[#allocation4 + $0x190] sm:$0xff] %vm3071_vm0, %v2514_v0  ;;  %122 = vst.msk [vmem:[#allocation4 + $0x198] sm:$0xff] %vm3071_vm0, %v2514_v0  ;;  %689 = vrot.lane.b32.xlu0 %v2774_v7, %s2518_s2  ;;  %s1612_s2 = sshll.u32 %s2534_s10, 4  ;;  %s1613_s2 = int_to_ptr.vmem [resolvable:$true] %s1612_s2 }
  0x4a   :  { %123 = vst.msk [vmem:[#allocation4 + $0x1a0] sm:$0xff] %vm3071_vm0, %v2514_v0  ;;  %124 = vst.msk [vmem:[#allocation4 + $0x1a8] sm:$0xff] %vm3071_vm0, %v2514_v0  ;;  %p2487_p3 = scmp.lt.s32.totalorder %s1613_s2, %s1613_s2 }
  0x4b   :  { %125 = vst.msk [vmem:[#allocation4 + $0x1b0] sm:$0xff] %vm3071_vm0, %v2514_v0  ;;  %126 = vst.msk [vmem:[#allocation4 + $0x1b8] sm:$0xff] %vm3071_vm0, %v2514_v0 }
  0x4c   :  { %127 = vst.msk [vmem:[#allocation4 + $0x1c0] sm:$0xff] %vm3071_vm0, %v2514_v0  ;;  %128 = vst.msk [vmem:[#allocation4 + $0x1c8] sm:$0xff] %vm3071_vm0, %v2514_v0  ;;  %1262 = vrot.lane.b32.xlu1 %v2766_v6, %s2519_s11 }
  0x4d   :  { %129 = vst.msk [vmem:[#allocation4 + $0x1d0] sm:$0xff] %vm3071_vm0, %v2514_v0  ;;  %130 = vst.msk [vmem:[#allocation4 + $0x1d8] sm:$0xff] %vm3071_vm0, %v2514_v0  ;;  %1013 = vrot.lane.b32.xlu0 %v2774_v7, %s2515_s27  ;;  %s2533_s27 = smov 30  }
  0x4e   :  { %131 = vst.msk [vmem:[#allocation4 + $0x1e0] sm:$0xff] %vm3071_vm0, %v2514_v0  ;;  %132 = vst.msk [vmem:[#allocation4 + $0x1e8] sm:$0xff] %vm3071_vm0, %v2514_v0 }
  0x4f   :  { %133 = vst.msk [vmem:[#allocation4 + $0x1f0] sm:$0xff] %vm3071_vm0, %v2514_v0  ;;  %134 = vst.msk [vmem:[#allocation4 + $0x1f8] sm:$0xff] %vm3071_vm0, %v2514_v0 }
  0x50   :  { %137 = vst.msk [vmem:[#allocation2] sm:$0xf] %vm136_vm1, %v135_v1  ;;  %304 = vrot.lane.b32.xlu1 %v1628_v54, %s2520_s16  ;;  %vm257_vm1 = vcmask 130160  }
  0x51   :  { %155 = vst.msk [vmem:[#allocation3] sm:$0xff] %vm3071_vm0, %v154_v2  ;;  %174 = vst.msk [vmem:[#allocation3 + $0x20] sm:$0xff] %vm3071_vm0, %v1625_v3  ;;  %1264 = vrot.lane.b32.xlu0 %v2774_v7, %s2519_s11  ;;  %s2482_s11 = scalar_lea.vmem %s1613_s2, 256 }
  0x52   :  { %190 = vst.msk [vmem:[#allocation3 + $0x40] sm:$0xff] %vm3071_vm0, %v1626_v4  ;;  %206 = vst.msk [vmem:[#allocation3 + $0x60] sm:$0xff] %vm3071_vm0, %v1627_v5  ;;  %vm292_vm0 = vcmask 244960   ;;  %p2483_p2 = scmp.ne.s32.totalorder %s1613_s2, %s2482_s11  ;;  %p2488_p4 = scmp.lt.s32.totalorder %s2482_s11, %s2482_s11 }
  0x53   :  { %302 = vst.msk [vmem:[#allocation4 + $0x80] sm:$0xff] %vm3073_vm9, %v1628_v54  ;;  %222 = vst.msk [vmem:[#allocation4] sm:$0xff] %vm3073_vm9, %v220_v55 }
  0x54   :  { %312 = vrot.lane.b32.xlu1 %v1628_v54, %s2522_s18  ;;  %p2489_p5 = por %p2488_p4, %p2487_p3 }
  0x55   :  { %308 = vrot.lane.b32.xlu0 %v1628_v54, %s2521_s17 }
  0x56   :  { %p2490_p6 = pnand %p2489_p5, %p2483_p2 }
  0x58   :  { %v496_v14 = vld [vmem:[#allocation3] sm:$0xff]  ;;  %320 = vrot.lane.b32.xlu1 %v1628_v54, %s2523_s19 }
  0x59   :  { %v500_v27 = vld [vmem:[#allocation3 + $0x20] sm:$0xff]  ;;  %316 = vrot.lane.b32.xlu0 %v1628_v54, %s2512_s8 }
  0x5a   :  { %v504_v33 = vld [vmem:[#allocation3 + $0x40] sm:$0xff] }
  0x5b   :  { %v508_v44 = vld [vmem:[#allocation3 + $0x60] sm:$0xff] }
  0x5c   :  { %328 = vrot.lane.b32.xlu1 %v1628_v54, %s2525_s0  ;;  %v845_v4 = vld [vmem:[#allocation4 + $0x80] sm:$0xff] }
  0x5d   :  { %324 = vrot.lane.b32.xlu0 %v1628_v54, %s2524_s20 }
  0x60   :  { %336 = vrot.lane.b32.xlu1 %v1628_v54, %s2527_s4 }
  0x61   :  { %332 = vrot.lane.b32.xlu0 %v1628_v54, %s2526_s21 }
  0x64   :  { %344 = vrot.lane.b32.xlu1 %v1628_v54, %s2529_s23 }
  0x65   :  { %340 = vrot.lane.b32.xlu0 %v1628_v54, %s2528_s22 }
  0x68   :  { %352 = vrot.lane.b32.xlu1 %v1628_v54, %s2531_s25 }
  0x69   :  { %348 = vrot.lane.b32.xlu0 %v1628_v54, %s2530_s24 }
  0x6c   :  { %360 = vrot.lane.b32.xlu1 %v1628_v54, %s2533_s27 }
  0x6d   :  { %356 = vrot.lane.b32.xlu0 %v1628_v54, %s2532_s26 }
  0x70   :  { %229 = vrot.lane.b32.xlu1 %v220_v55, %s2521_s17 }
  0x71   :  { %224 = vrot.lane.b32.xlu0 %v220_v55, %s2520_s16 }
  0x74   :  { %239 = vrot.lane.b32.xlu1 %v220_v55, %s2512_s8 }
  0x75   :  { %234 = vrot.lane.b32.xlu0 %v220_v55, %s2522_s18 }
  0x78   :  { %249 = vrot.lane.b32.xlu1 %v220_v55, %s2524_s20 }
  0x79   :  { %244 = vrot.lane.b32.xlu0 %v220_v55, %s2523_s19 }
  0x7c   :  { %259 = vrot.lane.b32.xlu1 %v220_v55, %s2526_s21 }
  0x7d   :  { %254 = vrot.lane.b32.xlu0 %v220_v55, %s2525_s0 }
  0x80   :  { %269 = vrot.lane.b32.xlu1 %v220_v55, %s2528_s22 }
  0x81   :  { %264 = vrot.lane.b32.xlu0 %v220_v55, %s2527_s4 }
  0x84   :  { %279 = vrot.lane.b32.xlu1 %v220_v55, %s2530_s24 }
  0x85   :  { %274 = vrot.lane.b32.xlu0 %v220_v55, %s2529_s23 }
  0x88   :  { %289 = vrot.lane.b32.xlu1 %v220_v55, %s2532_s26 }
  0x89   :  { %284 = vrot.lane.b32.xlu0 %v220_v55, %s2531_s25 }
  0x8d   :  { %294 = vrot.lane.b32.xlu0 %v220_v55, %s2533_s27 }
  0x9a   :  { %v150_v8 = vpop.permute.xlu1 %149 }
  0x9b   :  { %v140_v9 = vpop.permute.xlu0 %139  ;;  %153 = vst.msk [vmem:[#allocation2 + $0xc] sm:$0xf] %vm152_vm3, %v150_v8  ;;  %vm262_vm3 = vcmask 146560  }
  0x9c   :  { %143 = vst.msk [vmem:[#allocation2 + $0x4] sm:$0xf] %vm142_vm4, %v140_v9  ;;  %vm267_vm4 = vcmask 162960  }
  0x9e   :  { %v158_v10 = vpop.permute.xlu1 %157 }
  0x9f   :  { %v145_v11 = vpop.permute.xlu0 %144  ;;  %161 = vst.msk [vmem:[#allocation3 + $0x8] sm:$0xff] %vm160_vm5, %v158_v10 }
  0xa0   :  { %148 = vst.msk [vmem:[#allocation2 + $0x8] sm:$0xf] %vm147_vm6, %v145_v11  ;;  %vm277_vm6 = vcmask 195760  }
  0xa2   :  { %v168_v12 = vpop.permute.xlu1 %167 }
  0xa3   :  { %v163_v13 = vpop.permute.xlu0 %162  ;;  %171 = vst.msk [vmem:[#allocation3 + $0x18] sm:$0xff] %vm170_vm7, %v168_v12  ;;  %v494_v16 = vld [vmem:[#allocation2] sm:$0xff] }
  0xa4   :  { %166 = vst.msk [vmem:[#allocation3 + $0x10] sm:$0xff] %vm165_vm8, %v163_v13 }
  0xa6   :  { %v497_v18 = vld [vmem:[#allocation3 + $0x8] sm:$0xff]  ;;  %v181_v19 = vpop.permute.xlu1 %180 }
  0xa7   :  { %v177_v15 = vpop.permute.xlu0 %176  ;;  %v495_v17 = vld [vmem:[#allocation2 + $0x8] sm:$0xff]  ;;  %v2788_v21 = vpack.c.bf16 %v497_v18, %v496_v14  ;;  %183 = vst.msk [vmem:[#allocation3 + $0x30] sm:$0xff] %vm165_vm8, %v181_v19 }
  0xa8   :  { %179 = vst.msk [vmem:[#allocation3 + $0x28] sm:$0xff] %vm160_vm5, %v177_v15  ;;  %v2786_v20 = vpack.c.bf16 %v495_v17, %v494_v16 }
  0xa9   :  { %2132 = vmatprep.subr.bf16.mxu0 %v2788_v21 }
  0xaa   :  { %2128 = vmatprep.subr.bf16.mxu1 %v2786_v20  ;;  %2134 = vmatpush3.bf16.msra.mxu0 %v2788_v21  ;;  %v499_v24 = vld [vmem:[#allocation3 + $0x18] sm:$0xff]  ;;  %v193_v25 = vpop.permute.xlu1 %192 }
  0xab   :  { %v185_v22 = vpop.permute.xlu0 %184  ;;  %2130 = vmatpush3.bf16.msra.mxu1 %v2786_v20  ;;  %v498_v23 = vld [vmem:[#allocation3 + $0x10] sm:$0xff]  ;;  %195 = vst.msk [vmem:[#allocation3 + $0x48] sm:$0xff] %vm160_vm5, %v193_v25 }
  0xac   :  { %187 = vst.msk [vmem:[#allocation3 + $0x38] sm:$0xff] %vm170_vm7, %v185_v22  ;;  %v2796_v26 = vpack.c.bf16 %v499_v24, %v498_v23 }
  0xae   :  { %1813 = vmatmul.mubr.msk.f32.vlgmr.msra.gmra.mrb[0].mxu1 %vm3072_vm2, %v2774_v7  ;;  %2136 = vmatprep.subr.bf16.mxu0 %v2796_v26  ;;  %v201_v29 = vpop.permute.xlu1 %200  ;;  %v502_v32 = vld [vmem:[#allocation3 + $0x30] sm:$0xff] }
  0xaf   :  { %2138 = vmatpush3.bf16.msra.mxu0 %v2796_v26  ;;  %v501_v28 = vld [vmem:[#allocation3 + $0x28] sm:$0xff]  ;;  %v197_v30 = vpop.permute.xlu0 %196  ;;  %203 = vst.msk [vmem:[#allocation3 + $0x58] sm:$0xff] %vm170_vm7, %v201_v29 }
  0xb0   :  { %v2803_v31 = vpack.c.bf16 %v501_v28, %v500_v27  ;;  %199 = vst.msk [vmem:[#allocation3 + $0x50] sm:$0xff] %vm165_vm8, %v197_v30 }
  0xb2   :  { %2140 = vmatprep.subr.bf16.mxu0 %v2803_v31  ;;  %v505_v36 = vld [vmem:[#allocation3 + $0x48] sm:$0xff]  ;;  %v213_v37 = vpop.permute.xlu1 %212 }
  0xb3   :  { %2142 = vmatpush3.bf16.msra.mxu0 %v2803_v31  ;;  %v503_v34 = vld [vmem:[#allocation3 + $0x38] sm:$0xff]  ;;  %v209_v35 = vpop.permute.xlu0 %208  ;;  %v2812_v39 = vpack.c.bf16 %v505_v36, %v504_v33  ;;  %215 = vst.msk [vmem:[#allocation3 + $0x70] sm:$0xff] %vm165_vm8, %v213_v37  ;;  %vm287_vm8 = vcmask 228560  }
  0xb4   :  { %v2809_v38 = vpack.c.bf16 %v503_v34, %v502_v32  ;;  %211 = vst.msk [vmem:[#allocation3 + $0x68] sm:$0xff] %vm160_vm5, %v209_v35  ;;  %vm272_vm5 = vcmask 179360  }
  0xb6   :  { %2144 = vmatprep.subr.bf16.mxu0 %v2809_v38  ;;  %v507_v42 = vld [vmem:[#allocation3 + $0x58] sm:$0xff]  ;;  %v688_v52 = vpop.permute.xlu1 %687 }
  0xb7   :  { %2146 = vmatpush3.bf16.msra.mxu0 %v2809_v38  ;;  %v217_v40 = vpop.permute.xlu0 %216  ;;  %v506_v41 = vld [vmem:[#allocation3 + $0x50] sm:$0xff] }
  0xb8   :  { %2148 = vmatprep.subr.bf16.mxu0 %v2812_v39  ;;  %219 = vst.msk [vmem:[#allocation3 + $0x78] sm:$0xff] %vm170_vm7, %v217_v40  ;;  %v2819_v43 = vpack.c.bf16 %v507_v42, %v506_v41  ;;  %vm282_vm7 = vcmask 212160  }
  0xba   :  { %v510_v47 = vld [vmem:[#allocation3 + $0x70] sm:$0xff]  ;;  %v1012_v60 = vpop.permute.xlu1 %1011 }
  0xbb   :  { %2150 = vmatpush3.bf16.msra.mxu0 %v2812_v39  ;;  %v509_v45 = vld [vmem:[#allocation3 + $0x68] sm:$0xff]  ;;  %v690_v53 = vpop.permute.xlu0 %689 }
  0xbc   :  { %2152 = vmatprep.subr.bf16.mxu0 %v2819_v43  ;;  %v2823_v46 = vpack.c.bf16 %v509_v45, %v508_v44 }
  0xbe   :  { %v2910_v62 = vpop.permute.xlu1 %1262 }
  0xbf   :  { %2154 = vmatpush3.bf16.msra.mxu0 %v2819_v43  ;;  %v511_v48 = vld [vmem:[#allocation3 + $0x78] sm:$0xff]  ;;  %v1014_v61 = vpop.permute.xlu0 %1013 }
  0xc0   :  { %2156 = vmatprep.subr.bf16.mxu0 %v2823_v46  ;;  %v2827_v49 = vpack.c.bf16 %v511_v48, %v510_v47 }
  0xc2   :  { %v305_v0 = vpop.permute.xlu1 %304 }
  0xc3   :  { %2158 = vmatpush3.bf16.msra.mxu0 %v2823_v46  ;;  %v2912_v63 = vpop.permute.xlu0 %1264  ;;  %307 = vst.msk [vmem:[#allocation4 + $0x88] sm:$0xff] %vm227_vm10, %v305_v0 }
  0xc4   :  { %2160 = vmatprep.subr.bf16.mxu0 %v2827_v49 }
  0xc6   :  { %v313_v2 = vpop.permute.xlu1 %312 }
  0xc7   :  { %2162 = vmatpush3.bf16.msra.mxu0 %v2827_v49  ;;  %v309_v1 = vpop.permute.xlu0 %308  ;;  %315 = vst.msk [vmem:[#allocation4 + $0x98] sm:$0xff] %vm237_vm12, %v313_v2 }
  0xc8   :  { %2164 = vmatprep.subr.bf16.mxu0 %v2786_v20  ;;  %311 = vst.msk [vmem:[#allocation4 + $0x90] sm:$0xff] %vm232_vm11, %v309_v1 }
  0xca   :  { %v321_v5 = vpop.permute.xlu1 %320  ;;  %v846_v6 = vld [vmem:[#allocation4 + $0x88] sm:$0xff] }
  0xcb   :  { %v317_v3 = vpop.permute.xlu0 %316  ;;  %323 = vst.msk [vmem:[#allocation4 + $0xa8] sm:$0xff] %vm247_vm14, %v321_v5  ;;  %v2199_v8 = vpack.c.bf16 %v846_v6, %v845_v4  ;;  %v1629_v6 = vld [vmem:[%s3065_s1 + $0x10] sm:$0xff] }
  0xcc   :  { %319 = vst.msk [vmem:[#allocation4 + $0xa0] sm:$0xff] %vm242_vm13, %v317_v3  ;;  %369 = vrot.lane.b32.xlu1 %v1629_v6, %s2520_s16  ;;  %373 = vrot.lane.b32.xlu0 %v1629_v6, %s2521_s17 }
  0xcd   :  { %2200 = vmatprep.subr.bf16.mxu1 %v2199_v8  ;;  %367 = vst.msk [vmem:[#allocation4 + $0x100] sm:$0xff] %vm3073_vm9, %v1629_v6  ;;  %vm3075_vm9 = vcmask 130048  }
  0xce   :  { %v329_v10 = vpop.permute.xlu1 %328  ;;  %2202 = vmatpush3.bf16.msra.mxu1 %v2199_v8  ;;  %v848_v11 = vld [vmem:[#allocation4 + $0x98] sm:$0xff] }
  0xcf   :  { %v325_v7 = vpop.permute.xlu0 %324  ;;  %v847_v9 = vld [vmem:[#allocation4 + $0x90] sm:$0xff]  ;;  %331 = vst.msk [vmem:[#allocation4 + $0xb8] sm:$0xff] %vm257_vm1, %v329_v10 }
  0xd0   :  { %327 = vst.msk [vmem:[#allocation4 + $0xb0] sm:$0xff] %vm252_vm15, %v325_v7  ;;  %v2203_v13 = vpack.c.bf16 %v848_v11, %v847_v9  ;;  %377 = vrot.lane.b32.xlu1 %v1629_v6, %s2522_s18  ;;  %381 = vrot.lane.b32.xlu0 %v1629_v6, %s2512_s8 }
  0xd2   :  { %2204 = vmatprep.subr.bf16.mxu1 %v2203_v13  ;;  %v337_v15 = vpop.permute.xlu1 %336  ;;  %v850_v16 = vld [vmem:[#allocation4 + $0xa8] sm:$0xff] }
  0xd3   :  { %v333_v12 = vpop.permute.xlu0 %332  ;;  %v849_v14 = vld [vmem:[#allocation4 + $0xa0] sm:$0xff]  ;;  %2206 = vmatpush3.bf16.msra.mxu1 %v2203_v13  ;;  %339 = vst.msk [vmem:[#allocation4 + $0xc8] sm:$0xff] %vm267_vm4, %v337_v15 }
  0xd4   :  { %335 = vst.msk [vmem:[#allocation4 + $0xc0] sm:$0xff] %vm262_vm3, %v333_v12  ;;  %v2207_v18 = vpack.c.bf16 %v850_v16, %v849_v14  ;;  %385 = vrot.lane.b32.xlu1 %v1629_v6, %s2523_s19  ;;  %389 = vrot.lane.b32.xlu0 %v1629_v6, %s2524_s20 }
  0xd6   :  { %2208 = vmatprep.subr.bf16.mxu1 %v2207_v18  ;;  %v345_v22 = vpop.permute.xlu1 %344  ;;  %v852_v23 = vld [vmem:[#allocation4 + $0xb8] sm:$0xff] }
  0xd7   :  { %v341_v17 = vpop.permute.xlu0 %340  ;;  %v851_v19 = vld [vmem:[#allocation4 + $0xb0] sm:$0xff]  ;;  %2210 = vmatpush3.bf16.msra.mxu1 %v2207_v18  ;;  %347 = vst.msk [vmem:[#allocation4 + $0xd8] sm:$0xff] %vm277_vm6, %v345_v22 }
  0xd8   :  { %343 = vst.msk [vmem:[#allocation4 + $0xd0] sm:$0xff] %vm272_vm5, %v341_v17  ;;  %v2211_v25 = vpack.c.bf16 %v852_v23, %v851_v19  ;;  %393 = vrot.lane.b32.xlu1 %v1629_v6, %s2525_s0  ;;  %397 = vrot.lane.b32.xlu0 %v1629_v6, %s2526_s21 }
  0xda   :  { %2212 = vmatprep.subr.bf16.mxu1 %v2211_v25  ;;  %v353_v28 = vpop.permute.xlu1 %352  ;;  %v854_v29 = vld [vmem:[#allocation4 + $0xc8] sm:$0xff] }
  0xdb   :  { %v349_v24 = vpop.permute.xlu0 %348  ;;  %v853_v27 = vld [vmem:[#allocation4 + $0xc0] sm:$0xff]  ;;  %2214 = vmatpush3.bf16.msra.mxu1 %v2211_v25  ;;  %355 = vst.msk [vmem:[#allocation4 + $0xe8] sm:$0xff] %vm287_vm8, %v353_v28 }
  0xdc   :  { %351 = vst.msk [vmem:[#allocation4 + $0xe0] sm:$0xff] %vm282_vm7, %v349_v24  ;;  %v2215_v32 = vpack.c.bf16 %v854_v29, %v853_v27  ;;  %401 = vrot.lane.b32.xlu1 %v1629_v6, %s2527_s4  ;;  %405 = vrot.lane.b32.xlu0 %v1629_v6, %s2528_s22 }
  0xde   :  { %2216 = vmatprep.subr.bf16.mxu1 %v2215_v32  ;;  %v361_v34 = vpop.permute.xlu1 %360  ;;  %v856_v35 = vld [vmem:[#allocation4 + $0xd8] sm:$0xff] }
  0xdf   :  { %v357_v30 = vpop.permute.xlu0 %356  ;;  %v855_v33 = vld [vmem:[#allocation4 + $0xd0] sm:$0xff]  ;;  %2218 = vmatpush3.bf16.msra.mxu1 %v2215_v32 }
  0xe0   :  { %359 = vst.msk [vmem:[#allocation4 + $0xf0] sm:$0xff] %vm292_vm0, %v357_v30  ;;  %v2219_v37 = vpack.c.bf16 %v856_v35, %v855_v33  ;;  %409 = vrot.lane.b32.xlu1 %v1629_v6, %s2529_s23  ;;  %413 = vrot.lane.b32.xlu0 %v1629_v6, %s2530_s24 }
  0xe2   :  { %2220 = vmatprep.subr.bf16.mxu1 %v2219_v37  ;;  %v858_v41 = vld [vmem:[#allocation4 + $0xe8] sm:$0xff]  ;;  %v230_v42 = vpop.permute.xlu1 %229 }
  0xe3   :  { %v225_v36 = vpop.permute.xlu0 %224  ;;  %v857_v40 = vld [vmem:[#allocation4 + $0xe0] sm:$0xff]  ;;  %2222 = vmatpush3.bf16.msra.mxu1 %v2219_v37  ;;  %233 = vst.msk [vmem:[#allocation4 + $0x10] sm:$0xff] %vm232_vm11, %v230_v42 }
  0xe4   :  { %228 = vst.msk [vmem:[#allocation4 + $0x8] sm:$0xff] %vm227_vm10, %v225_v36  ;;  %v2223_v45 = vpack.c.bf16 %v858_v41, %v857_v40  ;;  %417 = vrot.lane.b32.xlu1 %v1629_v6, %s2531_s25  ;;  %421 = vrot.lane.b32.xlu0 %v1629_v6, %s2532_s26 }
  0xe6   :  { %2224 = vmatprep.subr.bf16.mxu1 %v2223_v45 }
  0xe7   :  { %v235_v44 = vpop.permute.xlu0 %234  ;;  %v859_v47 = vld [vmem:[#allocation4 + $0xf0] sm:$0xff]  ;;  %2226 = vmatpush3.bf16.msra.mxu1 %v2223_v45 }
  0xe8   :  { %238 = vst.msk [vmem:[#allocation4 + $0x18] sm:$0xff] %vm237_vm12, %v235_v44  ;;  %425 = vrot.lane.b32.xlu1 %v1629_v6, %s2533_s27 }
  0xea   :  { %v673_v7 = vld [vmem:[#allocation4 + $0x10] sm:$0xff] }
  0xeb   :  { %v672_v54 = vld [vmem:[#allocation4 + $0x8] sm:$0xff] }
  0xef   :  { %v674_v8 = vld [vmem:[#allocation4 + $0x18] sm:$0xff] }
  0xf0   :  { %v2235_v11 = vpack.c.bf16 %v674_v8, %v673_v7  ;;  %v1630_v7 = vld [vmem:[%s3065_s1 + $0x18] sm:$0xff] }
  0xf1   :  { %434 = vrot.lane.b32.xlu0 %v1630_v7, %s2520_s16  ;;  %438 = vrot.lane.b32.xlu1 %v1630_v7, %s2521_s17 }
  0xf5   :  { %442 = vrot.lane.b32.xlu0 %v1630_v7, %s2522_s18  ;;  %446 = vrot.lane.b32.xlu1 %v1630_v7, %s2512_s8 }
  0xf9   :  { %450 = vrot.lane.b32.xlu0 %v1630_v7, %s2523_s19  ;;  %454 = vrot.lane.b32.xlu1 %v1630_v7, %s2524_s20 }
  0xfd   :  { %458 = vrot.lane.b32.xlu0 %v1630_v7, %s2525_s0  ;;  %462 = vrot.lane.b32.xlu1 %v1630_v7, %s2526_s21 }
 0x101   :  { %466 = vrot.lane.b32.xlu0 %v1630_v7, %s2527_s4  ;;  %470 = vrot.lane.b32.xlu1 %v1630_v7, %s2528_s22 }
 0x105   :  { %474 = vrot.lane.b32.xlu0 %v1630_v7, %s2529_s23  ;;  %478 = vrot.lane.b32.xlu1 %v1630_v7, %s2530_s24 }
 0x109   :  { %482 = vrot.lane.b32.xlu0 %v1630_v7, %s2531_s25  ;;  %486 = vrot.lane.b32.xlu1 %v1630_v7, %s2532_s26 }
 0x10d   :  { %490 = vrot.lane.b32.xlu0 %v1630_v7, %s2533_s27 }
 0x181   :  { %v1814_v50 = vpop.f32.mrb[0].mxu1 }
 0x182   :  { %v587_v51 = vpop.f32.mrb[1].mxu1 }
 0x183   :  { %1847 = vmatprep.mubr.f32.mxu0 %v587_v51  ;;  %v245_v51 = vpop.permute.xlu0 %244 }
 0x184   :  { %1848 = vmatmul.mubr.f32.vlgmr.msra.gmra.mrb[0].mxu0 %v1814_v50  ;;  %v240_v50 = vpop.permute.xlu1 %239  ;;  %248 = vst.msk [vmem:[#allocation4 + $0x28] sm:$0xff] %vm247_vm14, %v245_v51 }
 0x185   :  { %2166 = vmatpush3.bf16.msra.mxu0 %v2786_v20  ;;  %1854 = vmatprep.mubr.msk.f32.mxu0 %vm3072_vm2, %v688_v52  ;;  %243 = vst.msk [vmem:[#allocation4 + $0x20] sm:$0xff] %vm242_vm13, %v240_v50 }
 0x186   :  { %2168 = vmatprep.subr.bf16.mxu0 %v2788_v21 }
 0x188   :  { %1855 = vmatmul.mubr.msk.f32.vlgmr.msra.gmra.mrb[2].mxu0 %vm3072_vm2, %v690_v53  ;;  %v671_v53 = vld [vmem:[#allocation4] sm:$0xff] }
 0x189   :  { %2170 = vmatpush3.bf16.msra.mxu0 %v2788_v21  ;;  %v2231_v55 = vpack.c.bf16 %v672_v54, %v671_v53 }
 0x18a   :  { %2172 = vmatprep.subr.bf16.mxu0 %v2796_v26 }
 0x18b   :  { %v676_v13 = vld [vmem:[#allocation4 + $0x28] sm:$0xff] }
 0x18c   :  { %v675_v12 = vld [vmem:[#allocation4 + $0x20] sm:$0xff] }
 0x18d   :  { %2174 = vmatpush3.bf16.msra.mxu0 %v2796_v26  ;;  %v2239_v16 = vpack.c.bf16 %v676_v13, %v675_v12 }
 0x18e   :  { %2176 = vmatprep.subr.bf16.mxu0 %v2803_v31 }
 0x191   :  { %2178 = vmatpush3.bf16.msra.mxu0 %v2803_v31 }
 0x192   :  { %2180 = vmatprep.subr.bf16.mxu0 %v2809_v38 }
 0x195   :  { %2182 = vmatpush3.bf16.msra.mxu0 %v2809_v38 }
 0x196   :  { %2184 = vmatprep.subr.bf16.mxu0 %v2812_v39 }
 0x199   :  { %2186 = vmatpush3.bf16.msra.mxu0 %v2812_v39 }
 0x19a   :  { %2188 = vmatprep.subr.bf16.mxu0 %v2819_v43 }
 0x19d   :  { %2190 = vmatpush3.bf16.msra.mxu0 %v2819_v43 }
 0x19e   :  { %2192 = vmatprep.subr.bf16.mxu0 %v2823_v46 }
 0x1a1   :  { %2194 = vmatpush3.bf16.msra.mxu0 %v2823_v46 }
 0x1a2   :  { %2196 = vmatprep.subr.bf16.mxu0 %v2827_v49 }
 0x1a5   :  { %2198 = vmatpush3.bf16.msra.mxu0 %v2827_v49 }
 0x1a6   :  { %2264 = vmatprep.subr.bf16.mxu0 %v2786_v20 }
 0x257   :  { %v2893_v56 = vpop.f32.mrb[0].mxu0 }
 0x258   :  { %v2895_v57 = vpop.f32.mrb[1].mxu0 }
 0x25b   :  { %v1856_v58 = vpop.f32.mrb[2].mxu0 }
 0x25c   :  { %v761_v59 = vpop.f32.mrb[3].mxu0 }
 0x25d   :  { %1889 = vmatprep.mubr.f32.mxu0 %v761_v59  ;;  %v255_v59 = vpop.permute.xlu0 %254 }
 0x25e   :  { %1890 = vmatmul.mubr.f32.vlgmr.msra.gmra.mrb[4].mxu0 %v1856_v58  ;;  %v250_v58 = vpop.permute.xlu1 %249  ;;  %258 = vst.msk [vmem:[#allocation4 + $0x38] sm:$0xff] %vm257_vm1, %v255_v59 }
 0x25f   :  { %2266 = vmatpush3.bf16.msra.mxu0 %v2786_v20  ;;  %1966 = vmatprep.mubr.msk.f32.mxu0 %vm3072_vm2, %v1012_v60  ;;  %253 = vst.msk [vmem:[#allocation4 + $0x30] sm:$0xff] %vm252_vm15, %v250_v58 }
 0x260   :  { %2268 = vmatprep.subr.bf16.mxu0 %v2788_v21 }
 0x262   :  { %1967 = vmatmul.mubr.msk.f32.vlgmr.msra.gmra.mrb[6].mxu0 %vm3072_vm2, %v1014_v61  ;;  %vm3074_vm2 = vcmask 261360   ;;  %v260_v60 = vpop.permute.xlu1 %259  ;;  %v265_v61 = vpop.permute.xlu0 %264 }
 0x263   :  { %2270 = vmatpush3.bf16.msra.mxu0 %v2788_v21  ;;  %363 = vst.msk [vmem:[#allocation4 + $0xf8] sm:$0xff] %vm3074_vm2, %v361_v34 }
 0x264   :  { %2272 = vmatprep.subr.bf16.mxu0 %v2796_v26  ;;  %263 = vst.msk [vmem:[#allocation4 + $0x40] sm:$0xff] %vm262_vm3, %v260_v60 }
 0x265   :  { %268 = vst.msk [vmem:[#allocation4 + $0x48] sm:$0xff] %vm267_vm4, %v265_v61  ;;  %v678_v18 = vld [vmem:[#allocation4 + $0x38] sm:$0xff] }
 0x266   :  { %v270_v0 = vpop.permute.xlu1 %269  ;;  %v275_v1 = vpop.permute.xlu0 %274  ;;  %v677_v17 = vld [vmem:[#allocation4 + $0x30] sm:$0xff] }
 0x267   :  { %2274 = vmatpush3.bf16.msra.mxu0 %v2796_v26  ;;  %273 = vst.msk [vmem:[#allocation4 + $0x50] sm:$0xff] %vm272_vm5, %v270_v0  ;;  %v2243_v19 = vpack.c.bf16 %v678_v18, %v677_v17 }
 0x268   :  { %2276 = vmatprep.subr.bf16.mxu0 %v2803_v31  ;;  %278 = vst.msk [vmem:[#allocation4 + $0x58] sm:$0xff] %vm277_vm6, %v275_v1 }
 0x26a   :  { %v860_v48 = vld [vmem:[#allocation4 + $0xf8] sm:$0xff]  ;;  %v280_v2 = vpop.permute.xlu1 %279  ;;  %v285_v3 = vpop.permute.xlu0 %284 }
 0x26b   :  { %2278 = vmatpush3.bf16.msra.mxu0 %v2803_v31  ;;  %v2227_v52 = vpack.c.bf16 %v860_v48, %v859_v47  ;;  %283 = vst.msk [vmem:[#allocation4 + $0x60] sm:$0xff] %vm282_vm7, %v280_v2  ;;  %v679_v22 = vld [vmem:[#allocation4 + $0x40] sm:$0xff] }
 0x26c   :  { %2280 = vmatprep.subr.bf16.mxu0 %v2809_v38  ;;  %288 = vst.msk [vmem:[#allocation4 + $0x68] sm:$0xff] %vm287_vm8, %v285_v3 }
 0x26d   :  { %2228 = vmatprep.subr.bf16.mxu1 %v2227_v52 }
 0x26e   :  { %2230 = vmatpush3.bf16.msra.mxu1 %v2227_v52  ;;  %v290_v4 = vpop.permute.xlu1 %289  ;;  %v295_v5 = vpop.permute.xlu0 %294 }
 0x26f   :  { %2282 = vmatpush3.bf16.msra.mxu0 %v2809_v38  ;;  %2232 = vmatprep.subr.bf16.mxu1 %v2231_v55  ;;  %293 = vst.msk [vmem:[#allocation4 + $0x70] sm:$0xff] %vm292_vm0, %v290_v4  ;;  %v682_v24 = vld [vmem:[#allocation4 + $0x58] sm:$0xff] }
 0x270   :  { %2284 = vmatprep.subr.bf16.mxu0 %v2812_v39  ;;  %298 = vst.msk [vmem:[#allocation4 + $0x78] sm:$0xff] %vm3074_vm2, %v295_v5  ;;  %vm3076_vm2 = vmmov %vm3075_vm9 }
 0x272   :  { %v683_v25 = vld [vmem:[#allocation4 + $0x60] sm:$0xff]  ;;  %v370_v29 = vpop.permute.xlu1 %369  ;;  %v374_v30 = vpop.permute.xlu0 %373 }
 0x273   :  { %2286 = vmatpush3.bf16.msra.mxu0 %v2812_v39  ;;  %v684_v27 = vld [vmem:[#allocation4 + $0x68] sm:$0xff]  ;;  %372 = vst.msk [vmem:[#allocation4 + $0x108] sm:$0xff] %vm227_vm10, %v370_v29 }
 0x274   :  { %2288 = vmatprep.subr.bf16.mxu0 %v2819_v43  ;;  %376 = vst.msk [vmem:[#allocation4 + $0x110] sm:$0xff] %vm232_vm11, %v374_v30 }
 0x276   :  { %v382_v32 = vpop.permute.xlu0 %381 }
 0x277   :  { %2290 = vmatpush3.bf16.msra.mxu0 %v2819_v43  ;;  %v686_v28 = vld [vmem:[#allocation4 + $0x78] sm:$0xff]  ;;  %384 = vst.msk [vmem:[#allocation4 + $0x120] sm:$0xff] %vm242_vm13, %v382_v32 }
 0x278   :  { %2292 = vmatprep.subr.bf16.mxu0 %v2823_v46 }
 0x27a   :  { %v1170_v33 = vld [vmem:[#allocation4 + $0x108] sm:$0xff]  ;;  %v390_v34 = vpop.permute.xlu0 %389 }
 0x27b   :  { %2294 = vmatpush3.bf16.msra.mxu0 %v2823_v46  ;;  %392 = vst.msk [vmem:[#allocation4 + $0x130] sm:$0xff] %vm252_vm15, %v390_v34 }
 0x27c   :  { %2296 = vmatprep.subr.bf16.mxu0 %v2827_v49 }
 0x27e   :  { %v398_v40 = vpop.permute.xlu0 %397 }
 0x27f   :  { %2298 = vmatpush3.bf16.msra.mxu0 %v2827_v49  ;;  %400 = vst.msk [vmem:[#allocation4 + $0x140] sm:$0xff] %vm262_vm3, %v398_v40 }
 0x280   :  { %2332 = vmatprep.subr.bf16.mxu0 %v2786_v20 }
 0x282   :  { %v406_v44 = vpop.permute.xlu0 %405  ;;  %v1175_v47 = vld [vmem:[#allocation4 + $0x130] sm:$0xff] }
 0x283   :  { %408 = vst.msk [vmem:[#allocation4 + $0x150] sm:$0xff] %vm272_vm5, %v406_v44 }
 0x286   :  { %v414_v50 = vpop.permute.xlu0 %413  ;;  %v1177_v52 = vld [vmem:[#allocation4 + $0x140] sm:$0xff] }
 0x287   :  { %416 = vst.msk [vmem:[#allocation4 + $0x160] sm:$0xff] %vm282_vm7, %v414_v50  ;;  %v1515_v50 = vld [vmem:[#allocation8 + $0x10] sm:$0xff] }
 0x28a   :  { %v1179_v59 = vld [vmem:[#allocation4 + $0x150] sm:$0xff] }
 0x28e   :  { %v1181_v1 = vld [vmem:[#allocation4 + $0x160] sm:$0xff] }
 0x331   :  { %v1891_v9 = vpop.f32.mrb[4].mxu0 }
 0x332   :  { %v836_v10 = vpop.f32.mrb[5].mxu0 }
 0x333   :  { %1924 = vmatprep.mubr.f32.mxu1 %v836_v10 }
 0x334   :  { %1925 = vmatmul.mubr.f32.vlgmr.msra.gmra.mrb[2].mxu1 %v1891_v9 }
 0x335   :  { %2234 = vmatpush3.bf16.msra.mxu1 %v2231_v55  ;;  %1959 = vmatprep.mubr.f32.mxu1 %v2895_v57  ;;  %v1968_v14 = vpop.f32.mrb[6].mxu0  ;;  %v680_v57 = vld [vmem:[#allocation4 + $0x48] sm:$0xff]  ;;  %v422_v55 = vpop.permute.xlu0 %421 }
 0x336   :  { %v1085_v15 = vpop.f32.mrb[7].mxu0  ;;  %2236 = vmatprep.subr.bf16.mxu1 %v2235_v11  ;;  %v2247_v23 = vpack.c.bf16 %v680_v57, %v679_v22  ;;  %424 = vst.msk [vmem:[#allocation4 + $0x170] sm:$0xff] %vm292_vm0, %v422_v55 }
 0x337   :  { %2001 = vmatprep.mubr.f32.mxu0 %v1085_v15 }
 0x338   :  { %2002 = vmatmul.mubr.f32.vlgmr.msra.gmra.mrb[8].mxu0 %v1968_v14 }
 0x339   :  { %2238 = vmatpush3.bf16.msra.mxu1 %v2235_v11  ;;  %2334 = vmatpush3.bf16.msra.mxu0 %v2786_v20  ;;  %v681_v20 = vld [vmem:[#allocation4 + $0x50] sm:$0xff]  ;;  %v435_v8 = vpop.permute.xlu0 %434 }
 0x33a   :  { %2336 = vmatprep.subr.bf16.mxu0 %v2788_v21  ;;  %2240 = vmatprep.subr.bf16.mxu1 %v2239_v16  ;;  %437 = vst.msk [vmem:[#allocation4 + $0x188] sm:$0xff] %vm227_vm10, %v435_v8 }
 0x33b   :  { %2043 = vmatprep.mubr.msk.f32.mxu0 %vm3075_vm9, %v2910_v62  ;;  %v2251_v62 = vpack.c.bf16 %v682_v24, %v681_v20  ;;  %vm3078_vm9 = vcmask 15360  }
 0x33c   :  { %2044 = vmatmul.mubr.msk.f32.vlgmr.msra.gmra.mrb[10].mxu0 %vm3076_vm2, %v2912_v63  ;;  %v685_v63 = vld [vmem:[#allocation4 + $0x70] sm:$0xff]  ;;  %vm3077_vm2 = vcmask 261360   ;;  %432 = vst.msk [vmem:[#allocation4 + $0x180] sm:$0xff] %vm3078_vm9, %v1630_v7 }
 0x33d   :  { %2242 = vmatpush3.bf16.msra.mxu1 %v2239_v16  ;;  %2338 = vmatpush3.bf16.msra.mxu0 %v2788_v21  ;;  %v2255_v21 = vpack.c.bf16 %v684_v27, %v683_v25  ;;  %v1183_v4 = vld [vmem:[#allocation4 + $0x170] sm:$0xff]  ;;  %v443_v10 = vpop.permute.xlu0 %442  ;;  %vm3079_vm10 = vmmov %vm3077_vm2 }
 0x33e   :  { %2340 = vmatprep.subr.bf16.mxu0 %v2796_v26  ;;  %2244 = vmatprep.subr.bf16.mxu1 %v2243_v19  ;;  %445 = vst.msk [vmem:[#allocation4 + $0x198] sm:$0xff] %vm237_vm12, %v443_v10 }
 0x341   :  { %2246 = vmatpush3.bf16.msra.mxu1 %v2243_v19  ;;  %2342 = vmatpush3.bf16.msra.mxu0 %v2796_v26  ;;  %v2259_v26 = vpack.c.bf16 %v686_v28, %v685_v63  ;;  %v451_v15 = vpop.permute.xlu0 %450  ;;  %v1421_v16 = vld [vmem:[#allocation4 + $0x188] sm:$0xff] }
 0x342   :  { %2344 = vmatprep.subr.bf16.mxu0 %v2803_v31  ;;  %2248 = vmatprep.subr.bf16.mxu1 %v2247_v23  ;;  %453 = vst.msk [vmem:[#allocation4 + $0x1a8] sm:$0xff] %vm247_vm14, %v451_v15 }
 0x343   :  { %v1420_v13 = vld [vmem:[#allocation4 + $0x180] sm:$0xff] }
 0x344   :  { %v2367_v18 = vpack.c.bf16 %v1421_v16, %v1420_v13 }
 0x345   :  { %2250 = vmatpush3.bf16.msra.mxu1 %v2247_v23  ;;  %2346 = vmatpush3.bf16.msra.mxu0 %v2803_v31  ;;  %v378_v31 = vpop.permute.xlu1 %377  ;;  %v459_v23 = vpop.permute.xlu0 %458  ;;  %v1423_v20 = vld [vmem:[#allocation4 + $0x198] sm:$0xff] }
 0x346   :  { %2348 = vmatprep.subr.bf16.mxu0 %v2809_v38  ;;  %2252 = vmatprep.subr.bf16.mxu1 %v2251_v62  ;;  %380 = vst.msk [vmem:[#allocation4 + $0x118] sm:$0xff] %vm237_vm12, %v378_v31 }
 0x347   :  { %461 = vst.msk [vmem:[#allocation4 + $0x1b8] sm:$0xff] %vm257_vm1, %v459_v23 }
 0x349   :  { %2254 = vmatpush3.bf16.msra.mxu1 %v2251_v62  ;;  %2350 = vmatpush3.bf16.msra.mxu0 %v2809_v38  ;;  %v1169_v38 = vld [vmem:[#allocation4 + $0x100] sm:$0xff]  ;;  %v467_v27 = vpop.permute.xlu0 %466 }
 0x34a   :  { %2352 = vmatprep.subr.bf16.mxu0 %v2812_v39  ;;  %2256 = vmatprep.subr.bf16.mxu1 %v2255_v21  ;;  %v2299_v35 = vpack.c.bf16 %v1170_v33, %v1169_v38  ;;  %469 = vst.msk [vmem:[#allocation4 + $0x1c8] sm:$0xff] %vm267_vm4, %v467_v27 }
 0x34d   :  { %2258 = vmatpush3.bf16.msra.mxu1 %v2255_v21  ;;  %2354 = vmatpush3.bf16.msra.mxu0 %v2812_v39  ;;  %v386_v39 = vpop.permute.xlu1 %385  ;;  %v1172_v37 = vld [vmem:[#allocation4 + $0x118] sm:$0xff]  ;;  %v1425_v21 = vld [vmem:[#allocation4 + $0x1a8] sm:$0xff]  ;;  %v475_v29 = vpop.permute.xlu0 %474 }
 0x34e   :  { %2356 = vmatprep.subr.bf16.mxu0 %v2819_v43  ;;  %2260 = vmatprep.subr.bf16.mxu1 %v2259_v26  ;;  %388 = vst.msk [vmem:[#allocation4 + $0x128] sm:$0xff] %vm247_vm14, %v386_v39  ;;  %v1427_v30 = vld [vmem:[#allocation4 + $0x1b8] sm:$0xff] }
 0x34f   :  { %477 = vst.msk [vmem:[#allocation4 + $0x1d8] sm:$0xff] %vm277_vm6, %v475_v29 }
 0x351   :  { %2262 = vmatpush3.bf16.msra.mxu1 %v2259_v26  ;;  %2358 = vmatpush3.bf16.msra.mxu0 %v2819_v43  ;;  %v1171_v43 = vld [vmem:[#allocation4 + $0x110] sm:$0xff]  ;;  %v394_v36 = vpop.permute.xlu1 %393  ;;  %v483_v39 = vpop.permute.xlu0 %482  ;;  %v1429_v33 = vld [vmem:[#allocation4 + $0x1c8] sm:$0xff] }
 0x352   :  { %2360 = vmatprep.subr.bf16.mxu0 %v2823_v46  ;;  %2300 = vmatprep.subr.bf16.mxu1 %v2299_v35  ;;  %396 = vst.msk [vmem:[#allocation4 + $0x138] sm:$0xff] %vm257_vm1, %v394_v36 }
 0x353   :  { %485 = vst.msk [vmem:[#allocation4 + $0x1e8] sm:$0xff] %vm287_vm8, %v483_v39 }
 0x354   :  { %1960 = vmatmul.mubr.f32.vlgmr.msra.gmra.mrb[2].mxu1 %v2893_v56  ;;  %v2303_v56 = vpack.c.bf16 %v1172_v37, %v1171_v43 }
 0x355   :  { %2362 = vmatpush3.bf16.msra.mxu0 %v2823_v46  ;;  %2302 = vmatpush3.bf16.msra.mxu1 %v2299_v35  ;;  %v1173_v46 = vld [vmem:[#allocation4 + $0x120] sm:$0xff]  ;;  %v402_v41 = vpop.permute.xlu1 %401  ;;  %v1174_v42 = vld [vmem:[#allocation4 + $0x128] sm:$0xff]  ;;  %v491_v36 = vpop.permute.xlu0 %490 }
 0x356   :  { %2364 = vmatprep.subr.bf16.mxu0 %v2827_v49  ;;  %2304 = vmatprep.subr.bf16.mxu1 %v2303_v56  ;;  %404 = vst.msk [vmem:[#allocation4 + $0x148] sm:$0xff] %vm267_vm4, %v402_v41  ;;  %v2307_v45 = vpack.c.bf16 %v1174_v42, %v1173_v46  ;;  %v1431_v37 = vld [vmem:[#allocation4 + $0x1d8] sm:$0xff] }
 0x357   :  { %493 = vst.msk [vmem:[#allocation4 + $0x1f8] sm:$0xff] %vm3079_vm10, %v491_v36 }
 0x359   :  { %2366 = vmatpush3.bf16.msra.mxu0 %v2827_v49  ;;  %2306 = vmatpush3.bf16.msra.mxu1 %v2303_v56  ;;  %v410_v48 = vpop.permute.xlu1 %409  ;;  %v1176_v49 = vld [vmem:[#allocation4 + $0x138] sm:$0xff] }
 0x35a   :  { %2308 = vmatprep.subr.bf16.mxu1 %v2307_v45  ;;  %412 = vst.msk [vmem:[#allocation4 + $0x158] sm:$0xff] %vm277_vm6, %v410_v48  ;;  %v2311_v51 = vpack.c.bf16 %v1176_v49, %v1175_v47  ;;  %v1433_v46 = vld [vmem:[#allocation4 + $0x1e8] sm:$0xff]  ;;  %v1513_v47 = vld [vmem:[#allocation8] sm:$0xff]  ;;  %v1514_v48 = vld [vmem:[#allocation8 + $0x8] sm:$0xff] }
 0x35b   :  { %v2399_v49 = vpack.c.bf16 %v1514_v48, %v1513_v47 }
 0x35d   :  { %2310 = vmatpush3.bf16.msra.mxu1 %v2307_v45  ;;  %v418_v53 = vpop.permute.xlu1 %417  ;;  %v1178_v54 = vld [vmem:[#allocation4 + $0x148] sm:$0xff] }
 0x35e   :  { %2312 = vmatprep.subr.bf16.mxu1 %v2311_v51  ;;  %420 = vst.msk [vmem:[#allocation4 + $0x168] sm:$0xff] %vm287_vm8, %v418_v53  ;;  %v2315_v58 = vpack.c.bf16 %v1178_v54, %v1177_v52  ;;  %v1435_v44 = vld [vmem:[#allocation4 + $0x1f8] sm:$0xff] }
 0x361   :  { %2314 = vmatpush3.bf16.msra.mxu1 %v2311_v51  ;;  %v426_v60 = vpop.permute.xlu1 %425  ;;  %v1180_v61 = vld [vmem:[#allocation4 + $0x158] sm:$0xff]  ;;  %v1516_v51 = vld [vmem:[#allocation8 + $0x18] sm:$0xff] }
 0x362   :  { %2316 = vmatprep.subr.bf16.mxu1 %v2315_v58  ;;  %428 = vst.msk [vmem:[#allocation4 + $0x178] sm:$0xff] %vm3077_vm2, %v426_v60  ;;  %v2319_v0 = vpack.c.bf16 %v1180_v61, %v1179_v59  ;;  %v2403_v54 = vpack.c.bf16 %v1516_v51, %v1515_v50  ;;  %v1639_v59 = vld [vmem:[%s3069_s5] ss:$0 sm:$0xff] }
 0x365   :  { %2318 = vmatpush3.bf16.msra.mxu1 %v2315_v58  ;;  %v1182_v2 = vld [vmem:[#allocation4 + $0x168] sm:$0xff]  ;;  %v439_v9 = vpop.permute.xlu1 %438 }
 0x366   :  { %2320 = vmatprep.subr.bf16.mxu1 %v2319_v0  ;;  %v2323_v3 = vpack.c.bf16 %v1182_v2, %v1181_v1  ;;  %441 = vst.msk [vmem:[#allocation4 + $0x190] sm:$0xff] %vm232_vm11, %v439_v9 }
 0x369   :  { %2322 = vmatpush3.bf16.msra.mxu1 %v2319_v0  ;;  %v1184_v5 = vld [vmem:[#allocation4 + $0x178] sm:$0xff]  ;;  %v447_v11 = vpop.permute.xlu1 %446 }
 0x36a   :  { %2324 = vmatprep.subr.bf16.mxu1 %v2323_v3  ;;  %v2327_v6 = vpack.c.bf16 %v1184_v5, %v1183_v4  ;;  %449 = vst.msk [vmem:[#allocation4 + $0x1a0] sm:$0xff] %vm242_vm13, %v447_v11 }
 0x36d   :  { %2326 = vmatpush3.bf16.msra.mxu1 %v2323_v3  ;;  %v455_v17 = vpop.permute.xlu1 %454  ;;  %v1422_v22 = vld [vmem:[#allocation4 + $0x190] sm:$0xff] }
 0x36e   :  { %2328 = vmatprep.subr.bf16.mxu1 %v2327_v6  ;;  %457 = vst.msk [vmem:[#allocation4 + $0x1b0] sm:$0xff] %vm252_vm15, %v455_v17  ;;  %v2371_v62 = vpack.c.bf16 %v1423_v20, %v1422_v22 }
 0x371   :  { %2330 = vmatpush3.bf16.msra.mxu1 %v2327_v6  ;;  %v463_v24 = vpop.permute.xlu1 %462  ;;  %v1424_v25 = vld [vmem:[#allocation4 + $0x1a0] sm:$0xff] }
 0x372   :  { %2368 = vmatprep.subr.bf16.mxu1 %v2367_v18  ;;  %465 = vst.msk [vmem:[#allocation4 + $0x1c0] sm:$0xff] %vm262_vm3, %v463_v24  ;;  %v2375_v28 = vpack.c.bf16 %v1425_v21, %v1424_v25 }
 0x375   :  { %v471_v63 = vpop.permute.xlu1 %470  ;;  %v1426_v26 = vld [vmem:[#allocation4 + $0x1b0] sm:$0xff] }
 0x376   :  { %473 = vst.msk [vmem:[#allocation4 + $0x1d0] sm:$0xff] %vm272_vm5, %v471_v63  ;;  %v2379_v32 = vpack.c.bf16 %v1427_v30, %v1426_v26 }
 0x379   :  { %v479_v31 = vpop.permute.xlu1 %478  ;;  %v1428_v38 = vld [vmem:[#allocation4 + $0x1c0] sm:$0xff] }
 0x37a   :  { %481 = vst.msk [vmem:[#allocation4 + $0x1e0] sm:$0xff] %vm282_vm7, %v479_v31  ;;  %v2383_v35 = vpack.c.bf16 %v1429_v33, %v1428_v38 }
 0x37d   :  { %v487_v34 = vpop.permute.xlu1 %486  ;;  %v1430_v43 = vld [vmem:[#allocation4 + $0x1d0] sm:$0xff] }
 0x37e   :  { %489 = vst.msk [vmem:[#allocation4 + $0x1f0] sm:$0xff] %vm292_vm0, %v487_v34  ;;  %v2387_v40 = vpack.c.bf16 %v1431_v37, %v1430_v43  ;;  %vm3080_vm0 = vcmask 261120  }
 0x37f   :  { %vm3081_vm11 = vmmov %vm3080_vm0 }
 0x380   :  { %vm3082_vm12 = vmmov %vm3080_vm0 }
 0x381   :  { %v1432_v56 = vld [vmem:[#allocation4 + $0x1e0] sm:$0xff]  ;;  %vm3083_vm13 = vmmov %vm3080_vm0 }
 0x382   :  { %v2391_v41 = vpack.c.bf16 %v1433_v46, %v1432_v56 }
 0x385   :  { %v1434_v42 = vld [vmem:[#allocation4 + $0x1f0] sm:$0xff] }
 0x386   :  { %v2395_v45 = vpack.c.bf16 %v1435_v44, %v1434_v42 }
 0x40b   :  { %v2003_v12 = vpop.f32.mrb[8].mxu0 }
 0x40c   :  { %v1160_v14 = vpop.f32.mrb[9].mxu0 }
 0x40d   :  { %2036 = vmatprep.mubr.f32.mxu1 %v1160_v14 }
 0x40e   :  { %2037 = vmatmul.mubr.f32.vlgmr.msra.gmra.mrb[2].mxu1 %v2003_v12 }
 0x40f   :  { %v2045_v19 = vpop.f32.mrb[10].mxu0  ;;  %2370 = vmatpush3.bf16.msra.mxu1 %v2367_v18 }
 0x410   :  { %v1336_v57 = vpop.f32.mrb[11].mxu0  ;;  %2372 = vmatprep.subr.bf16.mxu1 %v2371_v62 }
 0x411   :  { %2078 = vmatprep.mubr.f32.mxu0 %v1336_v57 }
 0x412   :  { %2079 = vmatmul.mubr.f32.vlgmr.msra.gmra.mrb[12].mxu0 %v2045_v19 }
 0x413   :  { %2374 = vmatpush3.bf16.msra.mxu1 %v2371_v62 }
 0x414   :  { %2376 = vmatprep.subr.bf16.mxu1 %v2375_v28 }
 0x417   :  { %2378 = vmatpush3.bf16.msra.mxu1 %v2375_v28 }
 0x418   :  { %2380 = vmatprep.subr.bf16.mxu1 %v2379_v32 }
 0x41b   :  { %2382 = vmatpush3.bf16.msra.mxu1 %v2379_v32 }
 0x41c   :  { %2384 = vmatprep.subr.bf16.mxu1 %v2383_v35 }
 0x41f   :  { %2386 = vmatpush3.bf16.msra.mxu1 %v2383_v35 }
 0x420   :  { %2388 = vmatprep.subr.bf16.mxu1 %v2387_v40 }
 0x423   :  { %2390 = vmatpush3.bf16.msra.mxu1 %v2387_v40 }
 0x424   :  { %2392 = vmatprep.subr.bf16.mxu1 %v2391_v41 }
 0x427   :  { %2394 = vmatpush3.bf16.msra.mxu1 %v2391_v41 }
 0x428   :  { %2396 = vmatprep.subr.bf16.mxu1 %v2395_v45 }
 0x42b   :  { %2398 = vmatpush3.bf16.msra.mxu1 %v2395_v45 }
 0x42c   :  { %2400 = vmatprep.subr.bf16.mxu1 %v2399_v49 }
 0x4e5   :  { %v2080_v52 = vpop.f32.mrb[12].mxu0 }
 0x4e6   :  { %v1411_v53 = vpop.f32.mrb[13].mxu0 }
 0x4e7   :  { %2113 = vmatprep.mubr.f32.mxu1 %v1411_v53 }
 0x4e8   :  { %2114 = vmatmul.mubr.f32.vlgmr.msra.gmra.mrb[2].mxu1 %v2080_v52 }
 0x4e9   :  { %2402 = vmatpush3.bf16.msra.mxu1 %v2399_v49 }
 0x4ea   :  { %2404 = vmatprep.subr.bf16.mxu1 %v2403_v54 }
 0x4ed   :  { %2406 = vmatpush3.bf16.msra.mxu1 %v2403_v54 }
 0x5bb   :  { %v2115_v55 = vpop.f32.mrb[2].mxu1 }
 0x5bc   :  { %v1502_v58 = vpop.f32.mrb[3].mxu1 }
 0x5bd   :  { %2124 = vmatprep.mubr.msk.f32.mxu1 %vm3080_vm0, %v1502_v58 }
 0x5be   :  { %2125 = vmatmul.mubr.msk.f32.vlgmr.msra.gmra.mrb[4].mxu1 %vm3081_vm11, %v2115_v55 }
 0x691   :  { %v2126_v60 = vpop.f32.mrb[4].mxu1 }
 0x692   :  { %v1602_v61 = vadd.f32 %v2126_v60, %v1639_v59  ;;  %v1596_v0 = vpop.f32.mrb[5].mxu1 }
 0x693   :  { %v1597_v1 = vadd.f32 %v1639_v59, %v1596_v0 }
 0x694   :  { %1606 = vst.msk [vmem:[#allocation10 + $0x8] sm:$0xff] %vm3082_vm12, %v1602_v61 }
 0x695   :  { %1605 = vst.msk [vmem:[#allocation10] sm:$0xff] %vm3083_vm13, %v1597_v1 }
 0x696   :  { %2493 = shalt.err (!%p2490_p6)
}
 0x697   :  { %s2494_s13 = scalar_lea.hbm %s3070_s6, 256 }
 0x698   :  { %p2495_p7 = scmp.ne.s32.totalorder %s3070_s6, %s2494_s13  ;;  %p2498_p8 = scmp.lt.u32.totalorder %s2494_s13, %s3070_s6 }
 0x69a   :  { %p2500_p9 = pnand %p2498_p8, %p2495_p7 }
 0x69c   :  { %2503 = shalt.err (!%p2500_p9)
}
 0x69d   :  { %1618 = dma.vmem_to_hbm [thread:$0]  %s1613_s2, 256, %s3070_s6, [#allocation7], %s2511_s7, %s2511_s7, %s2512_s8  }
 0x69e   :  { %2508 = dma.done.wait [#allocation7], 256  }
 0x69f   :  { %2509 = vsyncadd [#allocation7], 4294967040 }
 0x6a0   :  { %1622 = vsyncpa [#allocation6], 1 }
 0x6a1   :  { %1623 = vsyncpa [#allocation9], 1 }
 0x6a2   :  { %1624 = vsyncpa [#allocation7], 1 }

</bundles_post_ra>
